<compile_context>
chip_gen: v6e
topology: v6e:2x2x1
jax: 0.10.0
libtpu: 0.0.40
codegen_flags: <defaults>
</compile_context>

<pallas_src>
import numpy as np
import jax
import jax.numpy as jnp
from jax import lax
from jax.experimental import pallas as pl
from jax.experimental.pallas import tpu as pltpu

_EPS = 1e-5


def _round_up(v, m):
    return (v + m - 1) // m * m


def _is_pow2(v):
    return v > 0 and (v & (v - 1)) == 0


def _make_attention_kernel(N, H, W, Cin_p, Cout_p, matmul_dtype):
    HW = H * W
    L = N * HW

    def kernel(x_ref,
               w1a_ref, b1a_ref, g1_ref, be1_ref,
               w2_ref, b2_ref, g2_ref, be2_ref,
               gsc_ref, besc_ref,
               wm_ref, bm_ref,
               out_ref):
        # ---- per-lane spatial coordinates, built once on (1, L) int vectors ----
        lane = lax.broadcasted_iota(jnp.int32, (1, L), 1)
        p = jnp.bitwise_and(lane, HW - 1) if _is_pow2(HW) else lane % HW
        if _is_pow2(W):
            col = jnp.bitwise_and(p, W - 1)
            row = jnp.right_shift(p, W.bit_length() - 1)
        else:
            col = p % W
            row = p // W
        col_even = jnp.bitwise_and(col, 1) == 0
        row_even = jnp.bitwise_and(row, 1) == 0
        cm1 = col != 0        # dx = -1 valid
        cp1 = col != W - 1    # dx = +1 valid
        rm1 = row != 0        # dy = -1 valid (also guards cross-sample roll wrap)
        rp1 = row != H - 1    # dy = +1 valid (also guards cross-sample roll wrap)
        x_edge = jnp.logical_not(jnp.logical_and(cm1, cp1))
        y_edge = jnp.logical_not(jnp.logical_and(rm1, rp1))

        def shift(a, off):
            # b[:, i] = a[:, (i + off) mod L] via XLU lane rotation (wrap is masked).
            if off % L == 0:
                return a
            return pltpu.roll(a, (-off) % L, axis=1)

        tap_masks = {
            (-1, -1): jnp.logical_and(rm1, cm1), (-1, 0): rm1, (-1, 1): jnp.logical_and(rm1, cp1),
            (0, -1): cm1, (0, 0): None, (0, 1): cp1,
            (1, -1): jnp.logical_and(rp1, cm1), (1, 0): rp1, (1, 1): jnp.logical_and(rp1, cp1),
        }

        def im2col(inp):
            # (C, L) -> (9*C, L): 9 rolled + edge-masked copies, tap-major rows.
            slabs = []
            for k in range(9):
                dy, dx = k // 3 - 1, k % 3 - 1
                s = shift(inp, dy * W + dx)
                msk = tap_masks[(dy, dx)]
                if msk is not None:
                    s = jnp.where(msk, s, 0.0)
                slabs.append(s)
            return jnp.concatenate(slabs, axis=0)

        def mm(w, a):
            # MXU matmul; optional bf16 inputs, always f32 accumulation.
            return jnp.dot(w.astype(matmul_dtype), a.astype(matmul_dtype),
                           preferred_element_type=jnp.float32)

        def bn(y, gamma, beta, relu):
            # Training-mode BatchNorm over (N, H, W) == the lane axis; centered
            # (two-pass) variance, biased, all statistics in f32.
            inv_cnt = 1.0 / float(L)
            mean = jnp.sum(y, axis=1, keepdims=True) * inv_cnt
            d = y - mean
            var = jnp.sum(d * d, axis=1, keepdims=True) * inv_cnt
            out = d * (gamma * lax.rsqrt(var + _EPS)) + beta
            return jnp.maximum(out, 0.0) if relu else out

        x = x_ref[...]                                            # (Cin_p, L)

        # ---- trunk: [conv1 | shortcut 1x1] fused in one MXU matmul ----
        slab1 = im2col(x)                                         # (9*Cin_p, L)
        y = mm(w1a_ref[...], slab1) + b1a_ref[...]                # (2*Cout_p, L)
        o1 = bn(y[:Cout_p, :], g1_ref[...], be1_ref[...], relu=True)
        osc = bn(y[Cout_p:, :], gsc_ref[...], besc_ref[...], relu=False)

        slab2 = im2col(o1)                                        # (9*Cout_p, L)
        o2 = bn(mm(w2_ref[...], slab2) + b2_ref[...],
                g2_ref[...], be2_ref[...], relu=False)
        trunk = jnp.maximum(o2 + osc, 0.0)                        # (Cout_p, L)

        # ---- mask branch: 2x2 max-pool via parity max, 1x1 conv + sigmoid, then
        #      bilinear x2 upsample (align_corners=False) as 0.75/0.25 parity blends,
        #      all at full resolution (lane-dense) ----
        nbc = jnp.where(col_even, shift(x, 1), shift(x, -1))
        cmax = jnp.maximum(x, nbc)
        nbr = jnp.where(row_even, shift(cmax, W), shift(cmax, -W))
        pooled = jnp.maximum(cmax, nbr)                           # (Cin_p, L)
        m = jax.nn.sigmoid(mm(wm_ref[...], pooled) + bm_ref[...])  # (Cout_p, L)

        nbx = jnp.where(x_edge, m, jnp.where(col_even, shift(m, -1), shift(m, 1)))
        ux = 0.75 * m + 0.25 * nbx
        nby = jnp.where(y_edge, ux, jnp.where(row_even, shift(ux, -W), shift(ux, W)))
        ups = 0.75 * ux + 0.25 * nby

        out_ref[...] = trunk * ups

    return kernel


def attention_module_pallas(x_nchw, params, *, use_bf16_matmul=False):
    (w1, b1, g1, be1, w2, b2, g2, be2,
     wsc, bsc, gsc, besc, wm, bm) = params
    x = x_nchw.astype(jnp.float32)
    N, Cin, H, W = x.shape
    Cout = w1.shape[-1]
    HW = H * W
    L = N * HW
    Cin_p = _round_up(Cin, 8)
    Cout_p = _round_up(Cout, 8)

    # Batch folded into the lane axis: (Cin_p, N*H*W), channel dim padded to 8.
    x_flat = jnp.transpose(x.reshape(N, Cin, HW), (1, 0, 2)).reshape(Cin, L)
    if Cin_p != Cin:
        x_flat = jnp.pad(x_flat, ((0, Cin_p - Cin), (0, 0)))

    def colpad(v, n):
        v = v.reshape(-1).astype(jnp.float32)
        return jnp.zeros((n, 1), jnp.float32).at[:v.shape[0], 0].set(v)

    def stack3x3(w_hwio, ci_p, co_p):
        # HWIO (3,3,Ci,Co) -> (co_p, 9*ci_p), tap-major columns, zero padded channels.
        kh, kw, ci, co = w_hwio.shape
        wt = jnp.transpose(w_hwio, (3, 0, 1, 2)).astype(jnp.float32)      # (co,3,3,ci)
        wp = jnp.zeros((co_p, kh, kw, ci_p), jnp.float32).at[:co, :, :, :ci].set(wt)
        return wp.reshape(co_p, kh * kw * ci_p)

    w1s = stack3x3(w1, Cin_p, Cout_p)                      # (Cout_p, 9*Cin_p)
    w2s = stack3x3(w2, Cout_p, Cout_p)                     # (Cout_p, 9*Cout_p)
    # Fused shortcut 1x1 conv: extra Cout_p output rows, non-zero only on centre tap.
    wsc_rows = jnp.zeros((Cout_p, 9 * Cin_p), jnp.float32)
    wsc_rows = wsc_rows.at[:Cout, 4 * Cin_p:4 * Cin_p + Cin].set(wsc.T.astype(jnp.float32))
    w1a = jnp.concatenate([w1s, wsc_rows], axis=0)         # (2*Cout_p, 9*Cin_p)
    b1a = jnp.concatenate([colpad(b1, Cout_p), colpad(bsc, Cout_p)], axis=0)

    wm_p = jnp.zeros((Cout_p, Cin_p), jnp.float32).at[:Cout, :Cin].set(wm.T.astype(jnp.float32))

    matmul_dtype = jnp.bfloat16 if use_bf16_matmul else jnp.float32
    args = (
        x_flat,
        w1a, b1a, colpad(g1, Cout_p), colpad(be1, Cout_p),
        w2s, colpad(b2, Cout_p), colpad(g2, Cout_p), colpad(be2, Cout_p),
        colpad(gsc, Cout_p), colpad(besc, Cout_p),
        wm_p, colpad(bm, Cout_p),
    )
    kernel = _make_attention_kernel(N, H, W, Cin_p, Cout_p, matmul_dtype)

    out = pl.pallas_call(
        kernel,
        out_shape=jax.ShapeDtypeStruct((Cout_p, L), jnp.float32),
        in_specs=[pl.BlockSpec(memory_space=pltpu.MemorySpace.VMEM) for _ in args],
        out_specs=pl.BlockSpec(memory_space=pltpu.MemorySpace.VMEM),
    )(*args)
    out = out[:Cout].reshape(Cout, N, HW)
    return jnp.transpose(out, (1, 0, 2)).reshape(N, Cout, H, W)


def upsample_matrix_1d(out_size, in_size):
    # PyTorch F.interpolate(mode='bilinear', align_corners=False) source indexing.
    scale = in_size / out_size
    dst = np.arange(out_size, dtype=np.float64)
    src = np.maximum((dst + 0.5) * scale - 0.5, 0.0)
    i0 = np.minimum(np.floor(src).astype(np.int64), in_size - 1)
    i1 = np.minimum(i0 + 1, in_size - 1)
    lam = src - i0
    u = np.zeros((out_size, in_size), np.float32)
    u[np.arange(out_size), i0] += (1.0 - lam).astype(np.float32)
    u[np.arange(out_size), i1] += lam.astype(np.float32)
    return u


def attention_module_ref(x_nchw, params):
    # Pure-JAX reference with identical semantics (for self-check).
    (w1, b1, g1, be1, w2, b2, g2, be2,
     wsc, bsc, gsc, besc, wm, bm) = params
    hp = lax.Precision.HIGHEST
    x = jnp.transpose(x_nchw, (0, 2, 3, 1)).astype(jnp.float32)
    N, H, W, Cin = x.shape
    Hm, Wm = H // 2, W // 2

    def conv3x3(inp, w, b):
        return lax.conv_general_dilated(
            inp, w, (1, 1), 'SAME',
            dimension_numbers=('NHWC', 'HWIO', 'NHWC'), precision=hp) + b

    def bn(y, g, be):
        mean = y.mean(axis=(0, 1, 2), keepdims=True)
        var = ((y - mean) ** 2).mean(axis=(0, 1, 2), keepdims=True)
        return (y - mean) / jnp.sqrt(var + _EPS) * g + be

    o = jax.nn.relu(bn(conv3x3(x, w1, b1), g1, be1))
    o = bn(conv3x3(o, w2, b2), g2, be2)
    s = bn(jnp.einsum('nhwc,cd->nhwd', x, wsc, precision=hp) + bsc, gsc, besc)
    trunk = jax.nn.relu(o + s)

    pooled = x.reshape(N, Hm, 2, Wm, 2, Cin).max(axis=(2, 4))
    m = jax.nn.sigmoid(jnp.einsum('nijc,cd->nijd', pooled, wm, precision=hp) + bm)
    uh = jnp.asarray(upsample_matrix_1d(H, Hm))
    uw = jnp.asarray(upsample_matrix_1d(W, Wm))
    ups = jnp.einsum('hi,wj,nijc->nhwc', uh, uw, m, precision=hp)
    return jnp.transpose(trunk * ups, (0, 3, 1, 2))


if __name__ == "__main__":
    N, Cin, Cout, H, W = 2, 4, 8, 16, 16
    key = jax.random.PRNGKey(0)
    ks = jax.random.split(key, 16)
    f = lambda k, s, scale=0.1: scale * jax.random.normal(k, s, jnp.float32)
    params = (
        f(ks[0], (3, 3, Cin, Cout), 0.2),        # conv1 weight (HWIO)
        f(ks[1], (Cout,)),                        # conv1 bias
        1.0 + f(ks[2], (Cout,)),                  # bn1 gamma
        f(ks[3], (Cout,)),                        # bn1 beta
        f(ks[4], (3, 3, Cout, Cout), 0.2),        # conv2 weight
        f(ks[5], (Cout,)),                        # conv2 bias
        1.0 + f(ks[6], (Cout,)),                  # bn2 gamma
        f(ks[7], (Cout,)),                        # bn2 beta
        f(ks[8], (Cin, Cout), 0.3),               # shortcut 1x1 conv weight
        f(ks[9], (Cout,)),                        # shortcut conv bias
        1.0 + f(ks[10], (Cout,)),                 # shortcut bn gamma
        f(ks[11], (Cout,)),                       # shortcut bn beta
        f(ks[12], (Cin, Cout), 0.3),              # mask 1x1 conv weight
        f(ks[13], (Cout,)),                       # mask conv bias
    )
    x = jax.random.normal(ks[14], (N, Cin, H, W), jnp.float32)

    out = jax.block_until_ready(attention_module_pallas(x, params))
    ref = jax.block_until_ready(attention_module_ref(x, params))

    assert out.shape == (N, Cout, H, W)
    assert np.isfinite(np.asarray(out)).all()
    err = float(jnp.max(jnp.abs(out - ref)))
    assert err < 2e-2, f"max abs error {err}"
    print("KERNEL_OK")
</pallas_src>

<mosaic_0001>
module attributes {stable_mosaic.version = 11 : i64} {
  func.func @kernel(%arg0: memref<8x512xf32, #tpu.memory_space<vmem>>, %arg1: memref<16x72xf32, #tpu.memory_space<vmem>>, %arg2: memref<16x1xf32, #tpu.memory_space<vmem>>, %arg3: memref<8x1xf32, #tpu.memory_space<vmem>>, %arg4: memref<8x1xf32, #tpu.memory_space<vmem>>, %arg5: memref<8x72xf32, #tpu.memory_space<vmem>>, %arg6: memref<8x1xf32, #tpu.memory_space<vmem>>, %arg7: memref<8x1xf32, #tpu.memory_space<vmem>>, %arg8: memref<8x1xf32, #tpu.memory_space<vmem>>, %arg9: memref<8x1xf32, #tpu.memory_space<vmem>>, %arg10: memref<8x1xf32, #tpu.memory_space<vmem>>, %arg11: memref<8x8xf32, #tpu.memory_space<vmem>>, %arg12: memref<8x1xf32, #tpu.memory_space<vmem>>, %arg13: memref<8x512xf32, #tpu.memory_space<vmem>>) attributes {dimension_semantics = [], scalar_prefetch = 0 : i64, scratch_operands = 0 : i64, tpu.core_type = #tpu.core_type<tc>} {
    %0 = tpu.iota {dimensions = array<i32: 1>} : vector<1x512xi32>
    %c255_i32 = arith.constant 255 : i32
    %1 = vector.broadcast %c255_i32 : i32 to vector<1x512xi32>
    %2 = arith.andi %0, %1 : vector<1x512xi32>
    %c15_i32 = arith.constant 15 : i32
    %3 = vector.broadcast %c15_i32 : i32 to vector<1x512xi32>
    %4 = arith.andi %2, %3 : vector<1x512xi32>
    %c4_i32 = arith.constant 4 : i32
    %5 = vector.broadcast %c4_i32 : i32 to vector<1x512xi32>
    %6 = arith.shrsi %2, %5 : vector<1x512xi32>
    %c1_i32 = arith.constant 1 : i32
    %7 = vector.broadcast %c1_i32 : i32 to vector<1x512xi32>
    %8 = arith.andi %4, %7 : vector<1x512xi32>
    %c0_i32 = arith.constant 0 : i32
    %9 = vector.broadcast %c0_i32 : i32 to vector<1x512xi32>
    %10 = arith.cmpi eq, %8, %9 : vector<1x512xi32>
    %c1_i32_0 = arith.constant 1 : i32
    %11 = vector.broadcast %c1_i32_0 : i32 to vector<1x512xi32>
    %12 = arith.andi %6, %11 : vector<1x512xi32>
    %c0_i32_1 = arith.constant 0 : i32
    %13 = vector.broadcast %c0_i32_1 : i32 to vector<1x512xi32>
    %14 = arith.cmpi eq, %12, %13 : vector<1x512xi32>
    %c0_i32_2 = arith.constant 0 : i32
    %15 = vector.broadcast %c0_i32_2 : i32 to vector<1x512xi32>
    %16 = arith.cmpi ne, %4, %15 : vector<1x512xi32>
    %c15_i32_3 = arith.constant 15 : i32
    %17 = vector.broadcast %c15_i32_3 : i32 to vector<1x512xi32>
    %18 = arith.cmpi ne, %4, %17 : vector<1x512xi32>
    %c0_i32_4 = arith.constant 0 : i32
    %19 = vector.broadcast %c0_i32_4 : i32 to vector<1x512xi32>
    %20 = arith.cmpi ne, %6, %19 : vector<1x512xi32>
    %c15_i32_5 = arith.constant 15 : i32
    %21 = vector.broadcast %c15_i32_5 : i32 to vector<1x512xi32>
    %22 = arith.cmpi ne, %6, %21 : vector<1x512xi32>
    %23 = arith.andi %16, %18 : vector<1x512xi1>
    %cst = arith.constant dense<true> : vector<1x512xi1>
    %24 = arith.xori %23, %cst : vector<1x512xi1>
    %25 = arith.andi %20, %22 : vector<1x512xi1>
    %cst_6 = arith.constant dense<true> : vector<1x512xi1>
    %26 = arith.xori %25, %cst_6 : vector<1x512xi1>
    %27 = arith.andi %20, %16 : vector<1x512xi1>
    %28 = arith.andi %20, %18 : vector<1x512xi1>
    %29 = arith.andi %22, %16 : vector<1x512xi1>
    %30 = arith.andi %22, %18 : vector<1x512xi1>
    %c0 = arith.constant 0 : index
    %c0_7 = arith.constant 0 : index
    %31 = vector.load %arg0[%c0, %c0_7] : memref<8x512xf32, #tpu.memory_space<vmem>>, vector<8x512xf32>
    %c17_i32 = arith.constant 17 : i32
    %32 = tpu.dynamic_rotate %31 by %c17_i32 dim 1 : vector<8x512xf32>, i32 -> vector<8x512xf32>
    %cst_8 = arith.constant 0.000000e+00 : f32
    %33 = vector.shape_cast %27 : vector<1x512xi1> to vector<1x512xi1>
    %34 = vector.broadcast %33 : vector<1x512xi1> to vector<8x512xi1>
    %35 = vector.broadcast %cst_8 : f32 to vector<8x512xf32>
    %36 = arith.select %34, %32, %35 : vector<8x512xi1>, vector<8x512xf32>
    %c16_i32 = arith.constant 16 : i32
    %37 = tpu.dynamic_rotate %31 by %c16_i32 dim 1 : vector<8x512xf32>, i32 -> vector<8x512xf32>
    %cst_9 = arith.constant 0.000000e+00 : f32
    %38 = vector.shape_cast %20 : vector<1x512xi1> to vector<1x512xi1>
    %39 = vector.broadcast %38 : vector<1x512xi1> to vector<8x512xi1>
    %40 = vector.broadcast %cst_9 : f32 to vector<8x512xf32>
    %41 = arith.select %39, %37, %40 : vector<8x512xi1>, vector<8x512xf32>
    %c15_i32_10 = arith.constant 15 : i32
    %42 = tpu.dynamic_rotate %31 by %c15_i32_10 dim 1 : vector<8x512xf32>, i32 -> vector<8x512xf32>
    %cst_11 = arith.constant 0.000000e+00 : f32
    %43 = vector.shape_cast %28 : vector<1x512xi1> to vector<1x512xi1>
    %44 = vector.broadcast %43 : vector<1x512xi1> to vector<8x512xi1>
    %45 = vector.broadcast %cst_11 : f32 to vector<8x512xf32>
    %46 = arith.select %44, %42, %45 : vector<8x512xi1>, vector<8x512xf32>
    %c1_i32_12 = arith.constant 1 : i32
    %47 = tpu.dynamic_rotate %31 by %c1_i32_12 dim 1 : vector<8x512xf32>, i32 -> vector<8x512xf32>
    %cst_13 = arith.constant 0.000000e+00 : f32
    %48 = vector.shape_cast %16 : vector<1x512xi1> to vector<1x512xi1>
    %49 = vector.broadcast %48 : vector<1x512xi1> to vector<8x512xi1>
    %50 = vector.broadcast %cst_13 : f32 to vector<8x512xf32>
    %51 = arith.select %49, %47, %50 : vector<8x512xi1>, vector<8x512xf32>
    %c511_i32 = arith.constant 511 : i32
    %52 = tpu.dynamic_rotate %31 by %c511_i32 dim 1 : vector<8x512xf32>, i32 -> vector<8x512xf32>
    %cst_14 = arith.constant 0.000000e+00 : f32
    %53 = vector.shape_cast %18 : vector<1x512xi1> to vector<1x512xi1>
    %54 = vector.broadcast %53 : vector<1x512xi1> to vector<8x512xi1>
    %55 = vector.broadcast %cst_14 : f32 to vector<8x512xf32>
    %56 = arith.select %54, %52, %55 : vector<8x512xi1>, vector<8x512xf32>
    %c497_i32 = arith.constant 497 : i32
    %57 = tpu.dynamic_rotate %31 by %c497_i32 dim 1 : vector<8x512xf32>, i32 -> vector<8x512xf32>
    %cst_15 = arith.constant 0.000000e+00 : f32
    %58 = vector.shape_cast %29 : vector<1x512xi1> to vector<1x512xi1>
    %59 = vector.broadcast %58 : vector<1x512xi1> to vector<8x512xi1>
    %60 = vector.broadcast %cst_15 : f32 to vector<8x512xf32>
    %61 = arith.select %59, %57, %60 : vector<8x512xi1>, vector<8x512xf32>
    %c496_i32 = arith.constant 496 : i32
    %62 = tpu.dynamic_rotate %31 by %c496_i32 dim 1 : vector<8x512xf32>, i32 -> vector<8x512xf32>
    %cst_16 = arith.constant 0.000000e+00 : f32
    %63 = vector.shape_cast %22 : vector<1x512xi1> to vector<1x512xi1>
    %64 = vector.broadcast %63 : vector<1x512xi1> to vector<8x512xi1>
    %65 = vector.broadcast %cst_16 : f32 to vector<8x512xf32>
    %66 = arith.select %64, %62, %65 : vector<8x512xi1>, vector<8x512xf32>
    %c495_i32 = arith.constant 495 : i32
    %67 = tpu.dynamic_rotate %31 by %c495_i32 dim 1 : vector<8x512xf32>, i32 -> vector<8x512xf32>
    %cst_17 = arith.constant 0.000000e+00 : f32
    %68 = vector.shape_cast %30 : vector<1x512xi1> to vector<1x512xi1>
    %69 = vector.broadcast %68 : vector<1x512xi1> to vector<8x512xi1>
    %70 = vector.broadcast %cst_17 : f32 to vector<8x512xf32>
    %71 = arith.select %69, %67, %70 : vector<8x512xi1>, vector<8x512xf32>
    %72 = tpu.concatenate %36, %41, %46, %51, %31, %56, %61, %66, %71 in 0 : vector<8x512xf32>, vector<8x512xf32>, vector<8x512xf32>, vector<8x512xf32>, vector<8x512xf32>, vector<8x512xf32>, vector<8x512xf32>, vector<8x512xf32>, vector<8x512xf32> -> vector<72x512xf32>
    %c0_18 = arith.constant 0 : index
    %c0_19 = arith.constant 0 : index
    %73 = vector.load %arg1[%c0_18, %c0_19] : memref<16x72xf32, #tpu.memory_space<vmem>>, vector<16x72xf32>
    %cst_20 = arith.constant dense<0.000000e+00> : vector<16x512xf32>
    %74 = tpu.matmul %73, %72, %cst_20 {dimension_numbers = #tpu.dot_dimension_numbers<[1], [0], [0], [1], [0, 0, 1, 1], [], []>} : vector<16x72xf32>, vector<72x512xf32>, vector<16x512xf32> -> vector<16x512xf32>
    %c0_21 = arith.constant 0 : index
    %c0_22 = arith.constant 0 : index
    %75 = vector.load %arg2[%c0_21, %c0_22] : memref<16x1xf32, #tpu.memory_space<vmem>>, vector<16x1xf32>
    %76 = vector.broadcast %75 : vector<16x1xf32> to vector<16x512xf32>
    %77 = arith.addf %74, %76 : vector<16x512xf32>
    %78 = vector.extract_strided_slice %77 {offsets = [0, 0], sizes = [8, 512], strides = [1, 1]} : vector<16x512xf32> to vector<8x512xf32>
    %c0_23 = arith.constant 0 : index
    %c0_24 = arith.constant 0 : index
    %79 = vector.load %arg3[%c0_23, %c0_24] : memref<8x1xf32, #tpu.memory_space<vmem>>, vector<8x1xf32>
    %c0_25 = arith.constant 0 : index
    %c0_26 = arith.constant 0 : index
    %80 = vector.load %arg4[%c0_25, %c0_26] : memref<8x1xf32, #tpu.memory_space<vmem>>, vector<8x1xf32>
    %cst_27 = arith.constant dense<0.000000e+00> : vector<8xf32>
    %81 = vector.multi_reduction <add>, %78, %cst_27 [1] : vector<8x512xf32> to vector<8xf32>
    %82 = vector.shape_cast %81 : vector<8xf32> to vector<8x1xf32>
    %cst_28 = arith.constant 0.001953125 : f32
    %83 = vector.broadcast %cst_28 : f32 to vector<8x1xf32>
    %84 = arith.mulf %82, %83 : vector<8x1xf32>
    %85 = vector.broadcast %84 : vector<8x1xf32> to vector<8x512xf32>
    %86 = arith.subf %78, %85 : vector<8x512xf32>
    %87 = arith.mulf %86, %86 : vector<8x512xf32>
    %cst_29 = arith.constant dense<0.000000e+00> : vector<8xf32>
    %88 = vector.multi_reduction <add>, %87, %cst_29 [1] : vector<8x512xf32> to vector<8xf32>
    %89 = vector.shape_cast %88 : vector<8xf32> to vector<8x1xf32>
    %cst_30 = arith.constant 0.001953125 : f32
    %90 = vector.broadcast %cst_30 : f32 to vector<8x1xf32>
    %91 = arith.mulf %89, %90 : vector<8x1xf32>
    %cst_31 = arith.constant 9.99999974E-6 : f32
    %92 = vector.broadcast %cst_31 : f32 to vector<8x1xf32>
    %93 = arith.addf %91, %92 : vector<8x1xf32>
    %94 = math.rsqrt %93 : vector<8x1xf32>
    %95 = arith.mulf %79, %94 : vector<8x1xf32>
    %96 = vector.broadcast %95 : vector<8x1xf32> to vector<8x512xf32>
    %97 = arith.mulf %86, %96 : vector<8x512xf32>
    %98 = vector.broadcast %80 : vector<8x1xf32> to vector<8x512xf32>
    %99 = arith.addf %97, %98 : vector<8x512xf32>
    %cst_32 = arith.constant 0.000000e+00 : f32
    %100 = vector.broadcast %cst_32 : f32 to vector<8x512xf32>
    %101 = arith.maximumf %99, %100 : vector<8x512xf32>
    %102 = vector.extract_strided_slice %77 {offsets = [8, 0], sizes = [8, 512], strides = [1, 1]} : vector<16x512xf32> to vector<8x512xf32>
    %c0_33 = arith.constant 0 : index
    %c0_34 = arith.constant 0 : index
    %103 = vector.load %arg9[%c0_33, %c0_34] : memref<8x1xf32, #tpu.memory_space<vmem>>, vector<8x1xf32>
    %c0_35 = arith.constant 0 : index
    %c0_36 = arith.constant 0 : index
    %104 = vector.load %arg10[%c0_35, %c0_36] : memref<8x1xf32, #tpu.memory_space<vmem>>, vector<8x1xf32>
    %cst_37 = arith.constant dense<0.000000e+00> : vector<8xf32>
    %105 = vector.multi_reduction <add>, %102, %cst_37 [1] : vector<8x512xf32> to vector<8xf32>
    %106 = vector.shape_cast %105 : vector<8xf32> to vector<8x1xf32>
    %cst_38 = arith.constant 0.001953125 : f32
    %107 = vector.broadcast %cst_38 : f32 to vector<8x1xf32>
    %108 = arith.mulf %106, %107 : vector<8x1xf32>
    %109 = vector.broadcast %108 : vector<8x1xf32> to vector<8x512xf32>
    %110 = arith.subf %102, %109 : vector<8x512xf32>
    %111 = arith.mulf %110, %110 : vector<8x512xf32>
    %cst_39 = arith.constant dense<0.000000e+00> : vector<8xf32>
    %112 = vector.multi_reduction <add>, %111, %cst_39 [1] : vector<8x512xf32> to vector<8xf32>
    %113 = vector.shape_cast %112 : vector<8xf32> to vector<8x1xf32>
    %cst_40 = arith.constant 0.001953125 : f32
    %114 = vector.broadcast %cst_40 : f32 to vector<8x1xf32>
    %115 = arith.mulf %113, %114 : vector<8x1xf32>
    %cst_41 = arith.constant 9.99999974E-6 : f32
    %116 = vector.broadcast %cst_41 : f32 to vector<8x1xf32>
    %117 = arith.addf %115, %116 : vector<8x1xf32>
    %118 = math.rsqrt %117 : vector<8x1xf32>
    %119 = arith.mulf %103, %118 : vector<8x1xf32>
    %120 = vector.broadcast %119 : vector<8x1xf32> to vector<8x512xf32>
    %121 = arith.mulf %110, %120 : vector<8x512xf32>
    %122 = vector.broadcast %104 : vector<8x1xf32> to vector<8x512xf32>
    %123 = arith.addf %121, %122 : vector<8x512xf32>
    %c17_i32_42 = arith.constant 17 : i32
    %124 = tpu.dynamic_rotate %101 by %c17_i32_42 dim 1 : vector<8x512xf32>, i32 -> vector<8x512xf32>
    %cst_43 = arith.constant 0.000000e+00 : f32
    %125 = vector.shape_cast %27 : vector<1x512xi1> to vector<1x512xi1>
    %126 = vector.broadcast %125 : vector<1x512xi1> to vector<8x512xi1>
    %127 = vector.broadcast %cst_43 : f32 to vector<8x512xf32>
    %128 = arith.select %126, %124, %127 : vector<8x512xi1>, vector<8x512xf32>
    %c16_i32_44 = arith.constant 16 : i32
    %129 = tpu.dynamic_rotate %101 by %c16_i32_44 dim 1 : vector<8x512xf32>, i32 -> vector<8x512xf32>
    %cst_45 = arith.constant 0.000000e+00 : f32
    %130 = vector.shape_cast %20 : vector<1x512xi1> to vector<1x512xi1>
    %131 = vector.broadcast %130 : vector<1x512xi1> to vector<8x512xi1>
    %132 = vector.broadcast %cst_45 : f32 to vector<8x512xf32>
    %133 = arith.select %131, %129, %132 : vector<8x512xi1>, vector<8x512xf32>
    %c15_i32_46 = arith.constant 15 : i32
    %134 = tpu.dynamic_rotate %101 by %c15_i32_46 dim 1 : vector<8x512xf32>, i32 -> vector<8x512xf32>
    %cst_47 = arith.constant 0.000000e+00 : f32
    %135 = vector.shape_cast %28 : vector<1x512xi1> to vector<1x512xi1>
    %136 = vector.broadcast %135 : vector<1x512xi1> to vector<8x512xi1>
    %137 = vector.broadcast %cst_47 : f32 to vector<8x512xf32>
    %138 = arith.select %136, %134, %137 : vector<8x512xi1>, vector<8x512xf32>
    %c1_i32_48 = arith.constant 1 : i32
    %139 = tpu.dynamic_rotate %101 by %c1_i32_48 dim 1 : vector<8x512xf32>, i32 -> vector<8x512xf32>
    %cst_49 = arith.constant 0.000000e+00 : f32
    %140 = vector.shape_cast %16 : vector<1x512xi1> to vector<1x512xi1>
    %141 = vector.broadcast %140 : vector<1x512xi1> to vector<8x512xi1>
    %142 = vector.broadcast %cst_49 : f32 to vector<8x512xf32>
    %143 = arith.select %141, %139, %142 : vector<8x512xi1>, vector<8x512xf32>
    %c511_i32_50 = arith.constant 511 : i32
    %144 = tpu.dynamic_rotate %101 by %c511_i32_50 dim 1 : vector<8x512xf32>, i32 -> vector<8x512xf32>
    %cst_51 = arith.constant 0.000000e+00 : f32
    %145 = vector.shape_cast %18 : vector<1x512xi1> to vector<1x512xi1>
    %146 = vector.broadcast %145 : vector<1x512xi1> to vector<8x512xi1>
    %147 = vector.broadcast %cst_51 : f32 to vector<8x512xf32>
    %148 = arith.select %146, %144, %147 : vector<8x512xi1>, vector<8x512xf32>
    %c497_i32_52 = arith.constant 497 : i32
    %149 = tpu.dynamic_rotate %101 by %c497_i32_52 dim 1 : vector<8x512xf32>, i32 -> vector<8x512xf32>
    %cst_53 = arith.constant 0.000000e+00 : f32
    %150 = vector.shape_cast %29 : vector<1x512xi1> to vector<1x512xi1>
    %151 = vector.broadcast %150 : vector<1x512xi1> to vector<8x512xi1>
    %152 = vector.broadcast %cst_53 : f32 to vector<8x512xf32>
    %153 = arith.select %151, %149, %152 : vector<8x512xi1>, vector<8x512xf32>
    %c496_i32_54 = arith.constant 496 : i32
    %154 = tpu.dynamic_rotate %101 by %c496_i32_54 dim 1 : vector<8x512xf32>, i32 -> vector<8x512xf32>
    %cst_55 = arith.constant 0.000000e+00 : f32
    %155 = vector.shape_cast %22 : vector<1x512xi1> to vector<1x512xi1>
    %156 = vector.broadcast %155 : vector<1x512xi1> to vector<8x512xi1>
    %157 = vector.broadcast %cst_55 : f32 to vector<8x512xf32>
    %158 = arith.select %156, %154, %157 : vector<8x512xi1>, vector<8x512xf32>
    %c495_i32_56 = arith.constant 495 : i32
    %159 = tpu.dynamic_rotate %101 by %c495_i32_56 dim 1 : vector<8x512xf32>, i32 -> vector<8x512xf32>
    %cst_57 = arith.constant 0.000000e+00 : f32
    %160 = vector.shape_cast %30 : vector<1x512xi1> to vector<1x512xi1>
    %161 = vector.broadcast %160 : vector<1x512xi1> to vector<8x512xi1>
    %162 = vector.broadcast %cst_57 : f32 to vector<8x512xf32>
    %163 = arith.select %161, %159, %162 : vector<8x512xi1>, vector<8x512xf32>
    %164 = tpu.concatenate %128, %133, %138, %143, %101, %148, %153, %158, %163 in 0 : vector<8x512xf32>, vector<8x512xf32>, vector<8x512xf32>, vector<8x512xf32>, vector<8x512xf32>, vector<8x512xf32>, vector<8x512xf32>, vector<8x512xf32>, vector<8x512xf32> -> vector<72x512xf32>
    %c0_58 = arith.constant 0 : index
    %c0_59 = arith.constant 0 : index
    %165 = vector.load %arg5[%c0_58, %c0_59] : memref<8x72xf32, #tpu.memory_space<vmem>>, vector<8x72xf32>
    %cst_60 = arith.constant dense<0.000000e+00> : vector<8x512xf32>
    %166 = tpu.matmul %165, %164, %cst_60 {dimension_numbers = #tpu.dot_dimension_numbers<[1], [0], [0], [1], [0, 0, 1, 1], [], []>} : vector<8x72xf32>, vector<72x512xf32>, vector<8x512xf32> -> vector<8x512xf32>
    %c0_61 = arith.constant 0 : index
    %c0_62 = arith.constant 0 : index
    %167 = vector.load %arg6[%c0_61, %c0_62] : memref<8x1xf32, #tpu.memory_space<vmem>>, vector<8x1xf32>
    %168 = vector.broadcast %167 : vector<8x1xf32> to vector<8x512xf32>
    %169 = arith.addf %166, %168 : vector<8x512xf32>
    %c0_63 = arith.constant 0 : index
    %c0_64 = arith.constant 0 : index
    %170 = vector.load %arg7[%c0_63, %c0_64] : memref<8x1xf32, #tpu.memory_space<vmem>>, vector<8x1xf32>
    %c0_65 = arith.constant 0 : index
    %c0_66 = arith.constant 0 : index
    %171 = vector.load %arg8[%c0_65, %c0_66] : memref<8x1xf32, #tpu.memory_space<vmem>>, vector<8x1xf32>
    %cst_67 = arith.constant dense<0.000000e+00> : vector<8xf32>
    %172 = vector.multi_reduction <add>, %169, %cst_67 [1] : vector<8x512xf32> to vector<8xf32>
    %173 = vector.shape_cast %172 : vector<8xf32> to vector<8x1xf32>
    %cst_68 = arith.constant 0.001953125 : f32
    %174 = vector.broadcast %cst_68 : f32 to vector<8x1xf32>
    %175 = arith.mulf %173, %174 : vector<8x1xf32>
    %176 = vector.broadcast %175 : vector<8x1xf32> to vector<8x512xf32>
    %177 = arith.subf %169, %176 : vector<8x512xf32>
    %178 = arith.mulf %177, %177 : vector<8x512xf32>
    %cst_69 = arith.constant dense<0.000000e+00> : vector<8xf32>
    %179 = vector.multi_reduction <add>, %178, %cst_69 [1] : vector<8x512xf32> to vector<8xf32>
    %180 = vector.shape_cast %179 : vector<8xf32> to vector<8x1xf32>
    %cst_70 = arith.constant 0.001953125 : f32
    %181 = vector.broadcast %cst_70 : f32 to vector<8x1xf32>
    %182 = arith.mulf %180, %181 : vector<8x1xf32>
    %cst_71 = arith.constant 9.99999974E-6 : f32
    %183 = vector.broadcast %cst_71 : f32 to vector<8x1xf32>
    %184 = arith.addf %182, %183 : vector<8x1xf32>
    %185 = math.rsqrt %184 : vector<8x1xf32>
    %186 = arith.mulf %170, %185 : vector<8x1xf32>
    %187 = vector.broadcast %186 : vector<8x1xf32> to vector<8x512xf32>
    %188 = arith.mulf %177, %187 : vector<8x512xf32>
    %189 = vector.broadcast %171 : vector<8x1xf32> to vector<8x512xf32>
    %190 = arith.addf %188, %189 : vector<8x512xf32>
    %191 = arith.addf %190, %123 : vector<8x512xf32>
    %cst_72 = arith.constant 0.000000e+00 : f32
    %192 = vector.broadcast %cst_72 : f32 to vector<8x512xf32>
    %193 = arith.maximumf %191, %192 : vector<8x512xf32>
    %c511_i32_73 = arith.constant 511 : i32
    %194 = tpu.dynamic_rotate %31 by %c511_i32_73 dim 1 : vector<8x512xf32>, i32 -> vector<8x512xf32>
    %c1_i32_74 = arith.constant 1 : i32
    %195 = tpu.dynamic_rotate %31 by %c1_i32_74 dim 1 : vector<8x512xf32>, i32 -> vector<8x512xf32>
    %196 = vector.shape_cast %10 : vector<1x512xi1> to vector<1x512xi1>
    %197 = vector.broadcast %196 : vector<1x512xi1> to vector<8x512xi1>
    %198 = arith.select %197, %194, %195 : vector<8x512xi1>, vector<8x512xf32>
    %199 = arith.maximumf %31, %198 : vector<8x512xf32>
    %c496_i32_75 = arith.constant 496 : i32
    %200 = tpu.dynamic_rotate %199 by %c496_i32_75 dim 1 : vector<8x512xf32>, i32 -> vector<8x512xf32>
    %c16_i32_76 = arith.constant 16 : i32
    %201 = tpu.dynamic_rotate %199 by %c16_i32_76 dim 1 : vector<8x512xf32>, i32 -> vector<8x512xf32>
    %202 = vector.shape_cast %14 : vector<1x512xi1> to vector<1x512xi1>
    %203 = vector.broadcast %202 : vector<1x512xi1> to vector<8x512xi1>
    %204 = arith.select %203, %200, %201 : vector<8x512xi1>, vector<8x512xf32>
    %205 = arith.maximumf %199, %204 : vector<8x512xf32>
    %c0_77 = arith.constant 0 : index
    %c0_78 = arith.constant 0 : index
    %206 = vector.load %arg11[%c0_77, %c0_78] : memref<8x8xf32, #tpu.memory_space<vmem>>, vector<8x8xf32>
    %cst_79 = arith.constant dense<0.000000e+00> : vector<8x512xf32>
    %207 = tpu.matmul %206, %205, %cst_79 {dimension_numbers = #tpu.dot_dimension_numbers<[1], [0], [0], [1], [0, 0, 1, 1], [], []>} : vector<8x8xf32>, vector<8x512xf32>, vector<8x512xf32> -> vector<8x512xf32>
    %c0_80 = arith.constant 0 : index
    %c0_81 = arith.constant 0 : index
    %208 = vector.load %arg12[%c0_80, %c0_81] : memref<8x1xf32, #tpu.memory_space<vmem>>, vector<8x1xf32>
    %209 = vector.broadcast %208 : vector<8x1xf32> to vector<8x512xf32>
    %210 = arith.addf %207, %209 : vector<8x512xf32>
    %211 = arith.negf %210 : vector<8x512xf32>
    %212 = math.exp %211 : vector<8x512xf32>
    %cst_82 = arith.constant 1.000000e+00 : f32
    %213 = vector.broadcast %cst_82 : f32 to vector<8x512xf32>
    %214 = arith.addf %213, %212 : vector<8x512xf32>
    %215 = arith.divf %213, %214 : vector<8x512xf32>
    %c1_i32_83 = arith.constant 1 : i32
    %216 = tpu.dynamic_rotate %215 by %c1_i32_83 dim 1 : vector<8x512xf32>, i32 -> vector<8x512xf32>
    %c511_i32_84 = arith.constant 511 : i32
    %217 = tpu.dynamic_rotate %215 by %c511_i32_84 dim 1 : vector<8x512xf32>, i32 -> vector<8x512xf32>
    %218 = vector.shape_cast %10 : vector<1x512xi1> to vector<1x512xi1>
    %219 = vector.broadcast %218 : vector<1x512xi1> to vector<8x512xi1>
    %220 = arith.select %219, %216, %217 : vector<8x512xi1>, vector<8x512xf32>
    %221 = vector.shape_cast %24 : vector<1x512xi1> to vector<1x512xi1>
    %222 = vector.broadcast %221 : vector<1x512xi1> to vector<8x512xi1>
    %223 = arith.select %222, %215, %220 : vector<8x512xi1>, vector<8x512xf32>
    %cst_85 = arith.constant 7.500000e-01 : f32
    %224 = vector.broadcast %cst_85 : f32 to vector<8x512xf32>
    %225 = arith.mulf %224, %215 : vector<8x512xf32>
    %cst_86 = arith.constant 2.500000e-01 : f32
    %226 = vector.broadcast %cst_86 : f32 to vector<8x512xf32>
    %227 = arith.mulf %226, %223 : vector<8x512xf32>
    %228 = arith.addf %225, %227 : vector<8x512xf32>
    %c16_i32_87 = arith.constant 16 : i32
    %229 = tpu.dynamic_rotate %228 by %c16_i32_87 dim 1 : vector<8x512xf32>, i32 -> vector<8x512xf32>
    %c496_i32_88 = arith.constant 496 : i32
    %230 = tpu.dynamic_rotate %228 by %c496_i32_88 dim 1 : vector<8x512xf32>, i32 -> vector<8x512xf32>
    %231 = vector.shape_cast %14 : vector<1x512xi1> to vector<1x512xi1>
    %232 = vector.broadcast %231 : vector<1x512xi1> to vector<8x512xi1>
    %233 = arith.select %232, %229, %230 : vector<8x512xi1>, vector<8x512xf32>
    %234 = vector.shape_cast %26 : vector<1x512xi1> to vector<1x512xi1>
    %235 = vector.broadcast %234 : vector<1x512xi1> to vector<8x512xi1>
    %236 = arith.select %235, %228, %233 : vector<8x512xi1>, vector<8x512xf32>
    %cst_89 = arith.constant 7.500000e-01 : f32
    %237 = vector.broadcast %cst_89 : f32 to vector<8x512xf32>
    %238 = arith.mulf %237, %228 : vector<8x512xf32>
    %cst_90 = arith.constant 2.500000e-01 : f32
    %239 = vector.broadcast %cst_90 : f32 to vector<8x512xf32>
    %240 = arith.mulf %239, %236 : vector<8x512xf32>
    %241 = arith.addf %238, %240 : vector<8x512xf32>
    %242 = arith.mulf %193, %241 : vector<8x512xf32>
    %c0_91 = arith.constant 0 : index
    %c0_92 = arith.constant 0 : index
    %243 = vector.load %arg13[%c0_91, %c0_92] : memref<8x512xf32, #tpu.memory_space<vmem>>, vector<8x512xf32>
    tpu.vector_store %arg13[%c0_91, %c0_92], %242 {strides = array<i32>} : memref<8x512xf32, #tpu.memory_space<vmem>>, vector<8x512xf32>,
    return
  }
}

</mosaic_0001>

<bundles_post_ra>
// kernel: tpu_custom_call.1
= control target key start
LH: loop header
LB: loop body
LE: loop exit
PB: predicated region body
PF: predicated region fallthrough
CT: control target
= control target key end

     0   :  { %s1419_s29 = smov 111   ;;  %s2496_s0 = inlined_call_operand.vmem [shape: f32[8,512], index: 0, kind: input, shape index: {}]   ;;  %s2497_s1 = inlined_call_operand.vmem [shape: f32[16,72], index: 1, kind: input, shape index: {}]   ;;  %s2498_s2 = inlined_call_operand.vmem [shape: f32[16,1], index: 2, kind: input, shape index: {}]   ;;  %s2499_s3 = inlined_call_operand.vmem [shape: f32[8,1], index: 3, kind: input, shape index: {}]   ;;  %s2500_s4 = inlined_call_operand.vmem [shape: f32[8,1], index: 4, kind: input, shape index: {}]   ;;  %s2501_s5 = inlined_call_operand.vmem [shape: f32[8,72], index: 5, kind: input, shape index: {}]   ;;  %s2502_s6 = inlined_call_operand.vmem [shape: f32[8,1], index: 6, kind: input, shape index: {}]   ;;  %s2503_s7 = inlined_call_operand.vmem [shape: f32[8,1], index: 7, kind: input, shape index: {}]   ;;  %s2504_s8 = inlined_call_operand.vmem [shape: f32[8,1], index: 8, kind: input, shape index: {}]   ;;  %s2505_s9 = inlined_call_operand.vmem [shape: f32[8,1], index: 9, kind: input, shape index: {}]   ;;  %s2506_s10 = inlined_call_operand.vmem [shape: f32[8,1], index: 10, kind: input, shape index: {}]   ;;  %s2507_s11 = inlined_call_operand.vmem [shape: f32[8,8], index: 11, kind: input, shape index: {}]   ;;  %s2508_s12 = inlined_call_operand.vmem [shape: f32[8,1], index: 12, kind: input, shape index: {}]   ;;  %s2509_s13 = inlined_call_operand.hbm [shape: f32[8,512], index: 13, kind: output, shape index: {}]  }
   0x1   :  { %v1504_v0 = vld [vmem:[%s2496_s0 + $0x8] sm:$0xff]  ;;  %v1509_v1 = vld [vmem:[%s2496_s0] sm:$0xff] }
   0x2   :  { %307 = vrot.lane.b32.xlu0 %v1504_v0, %s1419_s29  ;;  %305 = vrot.lane.b32.xlu1 %v1509_v1, %s1419_s29 }
   0x3   :  { %18 = vsyncpa [#allocation3], 0  ;;  %v1518_v2 = vld [vmem:[%s2496_s0 + $0x10] sm:$0xff]  ;;  %s1420_s15 = smov 112   ;;  %s1421_s16 = smov 113   ;;  %v1535_v3 = vld [vmem:[%s2496_s0 + $0x18] sm:$0xff]  ;;  %v45_v7 = vlaneseq }
   0x4   :  { %s1422_s19 = smov 127   ;;  %s1423_s0 = smov 1   ;;  %v2545_v4 = vmov 0.0   ;;  %v1428_v5 = vmov 0   ;;  %v332_v6 = vld [vmem:[%s2498_s2] sm:$0xff]  ;;  %v2556_v36 = vmov 0 }
   0x5   :  { %s1424_s20 = smov 15   ;;  %s1425_s21 = smov 16   ;;  %415 = vmatprep.mubr.f32.mxu0 %v2545_v4  ;;  %492 = vmatprep.mubr.f32.mxu1 %v2545_v4  ;;  %v1590_v8 = vand.u32 127, %v45_v7  ;;  %v2558_v40 = vmov 0  ;;  %v2562_v44 = vmov 0  ;;  %v2565_v56 = vmov 0 }
   0x6   :  { %309 = vrot.lane.b32.xlu0 %v1518_v2, %s1419_s29  ;;  %282 = vrot.lane.b32.xlu1 %v1504_v0, %s1420_s15  ;;  %s1427_s22 = smov 17   ;;  %v2567_v60 = vmov 0 }
   0x7   :  { %1373 = vset.pattern.permute.xlu0 %v1428_v5  ;;  %1374 = vset.pattern.permute.xlu1 %v1428_v5  ;;  %v47_v9 = vadd.s32 128, %v1590_v8  ;;  %v50_v11 = vand.u32 255, %v1590_v8  ;;  %v49_v18 = vadd.s32 384, %v1590_v8  ;;  %v48_v19 = vadd.s32 256, %v1590_v8 }
   0x8   :  { %vm2514_vm5 = vcmp.lt.s32.totalorder %v1590_v8, 111  ;;  %vm2517_vm7 = vcmp.lt.s32.totalorder %v1590_v8, 112  ;;  %vm2520_vm9 = vcmp.lt.s32.totalorder %v1590_v8, 113 }
   0x9   :  { %v51_v10 = vand.u32 255, %v47_v9  ;;  %v1598_v14 = vand.u32 15, %v50_v11  ;;  %v1600_v15 = vshra.s32 %v50_v11, 4  ;;  %v53_v24 = vand.u32 255, %v49_v18 }
   0xa   :  { %284 = vrot.lane.b32.xlu0 %v1518_v2, %s1420_s15  ;;  %280 = vrot.lane.b32.xlu1 %v1509_v1, %s1420_s15  ;;  %v52_v26 = vand.u32 255, %v48_v19 }
   0xb   :  { %v1594_v12 = vand.u32 15, %v51_v10  ;;  %v1596_v13 = vshra.s32 %v51_v10, 4  ;;  %vm2512_vm2 = vcmp.ne.s32.totalorder %v1598_v14, 15  ;;  %vm2513_vm3 = vcmp.ne.s32.totalorder %v1600_v15, 15 }
   0xc   :  { %vm1621_vm6 = vmand %vm2513_vm3, %vm2512_vm2  ;;  %v1635_v30 = vand.u32 15, %v53_v24  ;;  %v1637_v31 = vshra.s32 %v53_v24, 4  ;;  %v1643_v34 = vand.u32 15, %v52_v26  ;;  %v1645_v35 = vshra.s32 %v52_v26, 4 }
   0xd   :  { %vm2528_vm0 = vcmp.ne.s32.totalorder %v1594_v12, 15  ;;  %vm2510_vm1 = vcmp.ne.s32.totalorder %v1596_v13, 15  ;;  %vm2511_vm8 = vcmp.ne.s32.totalorder %v1594_v12, 0  ;;  %vm2515_vm11 = vcmp.ne.s32.totalorder %v1598_v14, 0 }
   0xe   :  { %257 = vrot.lane.b32.xlu0 %v1504_v0, %s1421_s16  ;;  %259 = vrot.lane.b32.xlu1 %v1518_v2, %s1421_s16  ;;  %vm1612_vm4 = vmand %vm2510_vm1, %vm2528_vm0  ;;  %vm2524_vm12 = vcmp.ne.s32.totalorder %v1635_v30, 15  ;;  %vm2518_vm13 = vcmp.ne.s32.totalorder %v1637_v31, 15  ;;  %vm2516_vm14 = vcmp.ne.s32.totalorder %v1643_v34, 15  ;;  %vm2519_vm15 = vcmp.ne.s32.totalorder %v1645_v35, 15 }
   0xf   :  { %vm1656_vm10 = vmand %vm2510_vm1, %vm2511_vm8  ;;  %v63_v57 = vand.u32 1, %v1594_v12  ;;  %v62_v5 = vand.u32 1, %v1598_v14  ;;  %v2576_v24 = vmov 0 }
  0x10   :  { %v2557_v36 = vsel %vm1656_vm10, 4294967295, %v2556_v36  ;;  %vm1681_vm8 = vmand %vm2518_vm13, %vm2524_vm12 }
  0x11   :  { %vm1689_vm2 = vmand %vm2519_vm15, %vm2516_vm14  ;;  %vm2564_vm14 = vcmp.ne.s32.totalorder %v1598_v14, 15 }
  0x12   :  { %311 = vrot.lane.b32.xlu0 %v1535_v3, %s1419_s29  ;;  %255 = vrot.lane.b32.xlu1 %v1509_v1, %s1421_s16  ;;  %v2563_v44 = vsel %vm1689_vm2, 4294967295, %v2562_v44 }
  0x16   :  { %232 = vrot.lane.b32.xlu0 %v1504_v0, %s1422_s19  ;;  %234 = vrot.lane.b32.xlu1 %v1518_v2, %s1422_s19 }
  0x1a   :  { %286 = vrot.lane.b32.xlu0 %v1535_v3, %s1420_s15  ;;  %230 = vrot.lane.b32.xlu1 %v1509_v1, %s1422_s19 }
  0x1e   :  { %261 = vrot.lane.b32.xlu0 %v1535_v3, %s1421_s16  ;;  %205 = vrot.lane.b32.xlu1 %v1509_v1, %s1423_s0 }
  0x22   :  { %207 = vrot.lane.b32.xlu0 %v1504_v0, %s1423_s0  ;;  %236 = vrot.lane.b32.xlu1 %v1535_v3, %s1422_s19 }
  0x26   :  { %211 = vrot.lane.b32.xlu0 %v1535_v3, %s1423_s0  ;;  %180 = vrot.lane.b32.xlu1 %v1509_v1, %s1424_s20 }
  0x2a   :  { %182 = vrot.lane.b32.xlu0 %v1504_v0, %s1424_s20  ;;  %186 = vrot.lane.b32.xlu1 %v1535_v3, %s1424_s20 }
  0x2e   :  { %155 = vrot.lane.b32.xlu0 %v1509_v1, %s1425_s21  ;;  %157 = vrot.lane.b32.xlu1 %v1504_v0, %s1425_s21 }
  0x32   :  { %209 = vrot.lane.b32.xlu0 %v1518_v2, %s1423_s0  ;;  %161 = vrot.lane.b32.xlu1 %v1535_v3, %s1425_s21 }
  0x36   :  { %130 = vrot.lane.b32.xlu0 %v1509_v1, %s1427_s22  ;;  %132 = vrot.lane.b32.xlu1 %v1504_v0, %s1427_s22 }
  0x3a   :  { %184 = vrot.lane.b32.xlu0 %v1518_v2, %s1424_s20  ;;  %136 = vrot.lane.b32.xlu1 %v1535_v3, %s1427_s22 }
  0x3e   :  { %159 = vrot.lane.b32.xlu0 %v1518_v2, %s1425_s21  ;;  %134 = vrot.lane.b32.xlu1 %v1518_v2, %s1427_s22 }
  0x42   :  { %336 = vperm.xlu0 %1373, %v332_v6  }
  0x74   :  { %v308_v16 = vpop.permute.xlu0 %307  ;;  %v306_v17 = vpop.permute.xlu1 %305 }
  0x75   :  { %v316_v27 = vsel %vm2514_vm5, %v306_v17, %v308_v16 }
  0x78   :  { %v310_v21 = vpop.permute.xlu0 %309  ;;  %v283_v22 = vpop.permute.xlu1 %282 }
  0x79   :  { %v315_v25 = vsel %vm2514_vm5, %v308_v16, %v310_v21 }
  0x7a   :  { %1285 = vmatprep.subr.msk.mxu0 %vm1612_vm4, %v315_v25 }
  0x7b   :  { %1286 = vmatpush1.msk.msra.mxu0 %vm1621_vm6, %v316_v27  ;;  %v2580_v27 = vmov 0 }
  0x7c   :  { %v285_v28 = vpop.permute.xlu0 %284  ;;  %v281_v29 = vpop.permute.xlu1 %280 }
  0x7d   :  { %v290_v32 = vsel %vm2517_vm7, %v283_v22, %v285_v28  ;;  %v291_v33 = vsel %vm2517_vm7, %v281_v29, %v283_v22 }
  0x7e   :  { %1287 = vmatprep.subr.msk.mxu0 %vm2510_vm1, %v290_v32  ;;  %vm1673_vm1 = vmand %vm2513_vm3, %vm2515_vm11  ;;  %vm2521_vm11 = vcmp.ne.s32.totalorder %v1643_v34, 0  ;;  %v64_v32 = vand.u32 1, %v1643_v34 }
  0x7f   :  { %1288 = vmatpush1.msk.msra.mxu0 %vm2513_vm3, %v291_v33  ;;  %v2559_v40 = vsel %vm1673_vm1, 4294967295, %v2558_v40  ;;  %vm2523_vm3 = vcmp.lt.s32.totalorder %v1590_v8, 127  ;;  %v65_v33 = vand.u32 1, %v1635_v30 }
  0x80   :  { %v258_v37 = vpop.permute.xlu0 %257  ;;  %v260_v38 = vpop.permute.xlu1 %259 }
  0x81   :  { %v265_v39 = vsel %vm2520_vm9, %v258_v37, %v260_v38 }
  0x82   :  { %1289 = vmatprep.subr.msk.mxu0 %vm1656_vm10, %v265_v39  ;;  %vm2596_vm10 = vcmp.ne.s32.totalorder %v1600_v15, 0 }
  0x84   :  { %v312_v42 = vpop.permute.xlu0 %311  ;;  %v256_v43 = vpop.permute.xlu1 %255 }
  0x85   :  { %v266_v45 = vsel %vm2520_vm9, %v256_v43, %v258_v37  ;;  %v317_v46 = vsel %vm2514_vm5, %v312_v42, %v306_v17  ;;  %v314_v47 = vsel %vm2514_vm5, %v310_v21, %v312_v42  ;;  %vm2522_vm5 = vcmp.ne.s32.totalorder %v1635_v30, 0 }
  0x86   :  { %1290 = vmatpush1.msk.msra.mxu0 %vm1673_vm1, %v266_v45  ;;  %1303 = vmatprep.subr.msk.mxu1 %vm1681_vm8, %v317_v46 }
  0x87   :  { %1304 = vmatpush1.msk.msra.mxu1 %vm1689_vm2, %v314_v47 }
  0x88   :  { %v233_v48 = vpop.permute.xlu0 %232  ;;  %v235_v49 = vpop.permute.xlu1 %234 }
  0x89   :  { %v1708_v50 = vsel %vm2523_vm3, %v233_v48, %v235_v49 }
  0x8a   :  { %1291 = vmatprep.subr.msk.mxu0 %vm2528_vm0, %v1708_v50 }
  0x8c   :  { %v287_v51 = vpop.permute.xlu0 %286  ;;  %v231_v52 = vpop.permute.xlu1 %230 }
  0x8d   :  { %v289_v53 = vsel %vm2517_vm7, %v285_v28, %v287_v51  ;;  %v292_v54 = vsel %vm2517_vm7, %v287_v51, %v281_v29  ;;  %v1720_v55 = vsel %vm2523_vm3, %v231_v52, %v233_v48  ;;  %vm1734_vm7 = vmand %vm2518_vm13, %vm2522_vm5  ;;  %vm1788_vm5 = vcmp.eq.s32.totalorder %v62_v5, 0 }
  0x8e   :  { %1292 = vmatpush1.msk.msra.mxu0 %vm2564_vm14, %v1720_v55  ;;  %1305 = vmatprep.subr.msk.mxu1 %vm2518_vm13, %v292_v54  ;;  %v2566_v56 = vsel %vm1734_vm7, 4294967295, %v2565_v56  ;;  %vm1744_vm14 = vmand %vm2519_vm15, %vm2521_vm11  ;;  %vm2525_vm13 = vcmp.lt.s32.totalorder %v1590_v8, 1  ;;  %vm2572_vm11 = vcmp.ne.s32.totalorder %v1643_v34, 15 }
  0x8f   :  { %1306 = vmatpush1.msk.msra.mxu1 %vm2519_vm15, %v289_v53  ;;  %373 = vmatprep.subr.mxu0 %v1504_v0  ;;  %v2568_v60 = vsel %vm1744_vm14, 4294967295, %v2567_v60  ;;  %vm1758_vm15 = vcmp.eq.s32.totalorder %v63_v57, 0  ;;  %v2593_v53 = vmov 0 }
  0x90   :  { %v262_v58 = vpop.permute.xlu0 %261  ;;  %v206_v59 = vpop.permute.xlu1 %205  ;;  %374 = vmatpush1.msra.mxu0 %v1509_v1 }
  0x91   :  { %v264_v61 = vsel %vm2520_vm9, %v260_v38, %v262_v58  ;;  %v267_v62 = vsel %vm2520_vm9, %v262_v58, %v256_v43  ;;  %vm2571_vm9 = vcmp.ne.s32.totalorder %v1594_v12, 0 }
  0x92   :  { %1307 = vmatprep.subr.msk.mxu1 %vm1734_vm7, %v267_v62 }
  0x93   :  { %1308 = vmatpush1.msk.msra.mxu1 %vm1744_vm14, %v264_v61  ;;  %vm2579_vm14 = vcmp.ne.s32.totalorder %v1600_v15, 0  ;;  %v2600_v61 = vmov 0 }
  0x94   :  { %v208_v6 = vpop.permute.xlu0 %207  ;;  %v237_v7 = vpop.permute.xlu1 %236 }
  0x95   :  { %v1765_v9 = vsel %vm2525_vm13, %v206_v59, %v208_v6  ;;  %v1769_v10 = vsel %vm2523_vm3, %v235_v49, %v237_v7  ;;  %v1773_v11 = vsel %vm2523_vm3, %v237_v7, %v231_v52  ;;  %vm2530_vm3 = vcmp.ne.s32.totalorder %v1596_v13, 0  ;;  %v330_v7 = vld [vmem:[%s2497_s1] sm:$0xff] }
  0x96   :  { %1293 = vmatprep.subr.msk.mxu0 %vm2571_vm9, %v1765_v9  ;;  %1309 = vmatprep.subr.msk.mxu1 %vm2524_vm12, %v1773_v11  ;;  %vm2529_vm12 = vcmp.lt.s32.totalorder %v1590_v8, 15  ;;  %vm2578_vm9 = vcmp.ne.s32.totalorder %v1598_v14, 15 }
  0x97   :  { %1310 = vmatpush1.msk.msra.mxu1 %vm2572_vm11, %v1769_v10  ;;  %vm2575_vm11 = vcmp.ne.s32.totalorder %v1598_v14, 0  ;;  %vm1820_vm7 = vmand %vm2579_vm14, %vm2578_vm9  ;;  %vm1839_vm14 = vcmp.eq.s32.totalorder %v64_v32, 0  ;;  %vm1843_vm9 = vcmp.eq.s32.totalorder %v65_v33, 0  ;;  %v70_v33 = vand.u32 1, %v1600_v15 }
  0x98   :  { %v212_v18 = vpop.permute.xlu0 %211  ;;  %v181_v19 = vpop.permute.xlu1 %180  ;;  %450 = vmatprep.subr.mxu1 %v1535_v3  ;;  %v2581_v27 = vsel %vm1820_vm7, 4294967295, %v2580_v27 }
  0x99   :  { %v1796_v21 = vsel %vm2525_vm13, %v212_v18, %v206_v59  ;;  %451 = vmatpush1.msra.mxu1 %v1518_v2  ;;  %vm1812_vm13 = vmand %vm2530_vm3, %vm2528_vm0  ;;  %vm2586_vm0 = vcmp.lt.s32.totalorder %v1590_v8, 1  ;;  %v2597_v59 = vmov 0 }
  0x9a   :  { %1294 = vmatpush1.msk.msra.mxu0 %vm2575_vm11, %v1796_v21  ;;  %v2577_v24 = vsel %vm1812_vm13, 4294967295, %v2576_v24  ;;  %vm2531_vm11 = vcmp.lt.s32.totalorder %v1590_v8, 16 }
  0x9c   :  { %v183_v25 = vpop.permute.xlu0 %182  ;;  %v187_v26 = vpop.permute.xlu1 %186 }
  0x9d   :  { %v191_v28 = vsel %vm2529_vm12, %v181_v19, %v183_v25  ;;  %v192_v29 = vsel %vm2529_vm12, %v187_v26, %v181_v19  ;;  %vm2587_vm12 = vmmov %vm2586_vm0 }
  0x9e   :  { %1295 = vmatprep.subr.msk.mxu0 %vm1812_vm13, %v191_v28  ;;  %vm2592_vm13 = vcmp.ne.s32.totalorder %v1596_v13, 0 }
  0x9f   :  { %1296 = vmatpush1.msk.msra.mxu0 %vm1820_vm7, %v192_v29  ;;  %vm2591_vm7 = vcmp.ne.s32.totalorder %v1594_v12, 0 }
  0xa0   :  { %v156_v37 = vpop.permute.xlu0 %155  ;;  %v158_v38 = vpop.permute.xlu1 %157  ;;  %vm1878_vm1 = vmand %vm2592_vm13, %vm2591_vm7  ;;  %vm2599_vm13 = vcmp.ne.s32.totalorder %v1635_v30, 15 }
  0xa1   :  { %v166_v39 = vsel %vm2531_vm11, %v156_v37, %v158_v38  ;;  %v2594_v53 = vsel %vm1878_vm1, 4294967295, %v2593_v53 }
  0xa2   :  { %1297 = vmatprep.subr.msk.mxu0 %vm2530_vm3, %v166_v39  ;;  %vm2537_vm3 = vcmp.lt.s32.totalorder %v1590_v8, 17 }
  0xa4   :  { %v210_v45 = vpop.permute.xlu0 %209  ;;  %v162_v46 = vpop.permute.xlu1 %161 }
  0xa5   :  { %v1849_v47 = vsel %vm2586_vm0, %v210_v45, %v212_v18  ;;  %v1853_v48 = vsel %vm2587_vm12, %v208_v6, %v210_v45  ;;  %v167_v49 = vsel %vm2531_vm11, %v162_v46, %v156_v37  ;;  %vm2588_vm0 = vcmp.ne.s32.totalorder %v1600_v15, 0 }
  0xa6   :  { %1298 = vmatpush1.msk.msra.mxu0 %vm2588_vm0, %v167_v49  ;;  %vm2589_vm12 = vcmp.ne.s32.totalorder %v1635_v30, 0  ;;  %vm2590_vm11 = vcmp.ne.s32.totalorder %v1643_v34, 0  ;;  %vm2539_vm0 = vcmp.ne.s32.totalorder %v1637_v31, 0  ;;  %v2603_v6 = vmov 0 }
  0xa7   :  { %1311 = vmatprep.subr.msk.mxu1 %vm2589_vm12, %v1849_v47  ;;  %vm2540_vm12 = vcmp.ne.s32.totalorder %v1645_v35, 0  ;;  %vm1900_vm2 = vmand %vm2539_vm0, %vm2599_vm13  ;;  %vm2607_vm0 = vcmp.lt.s32.totalorder %v1590_v8, 17  ;;  %v73_v37 = vand.u32 1, %v1637_v31 }
  0xa8   :  { %1312 = vmatpush1.msk.msra.mxu1 %vm2590_vm11, %v1853_v48  ;;  %v131_v54 = vpop.permute.xlu0 %130  ;;  %v133_v57 = vpop.permute.xlu1 %132  ;;  %vm2595_vm11 = vcmp.ne.s32.totalorder %v1598_v14, 0  ;;  %v2601_v61 = vsel %vm1900_vm2, 4294967295, %v2600_v61 }
  0xa9   :  { %v141_v58 = vsel %vm2537_vm3, %v131_v54, %v133_v57  ;;  %vm1892_vm7 = vmand %vm2596_vm10, %vm2595_vm11  ;;  %vm2602_vm3 = vcmp.ne.s32.totalorder %v1643_v34, 15  ;;  %vm2541_vm10 = vcmask 588800   ;;  %vm2605_vm11 = vcmp.lt.s32.totalorder %v1590_v8, 15 }
  0xaa   :  { %1299 = vmatprep.subr.msk.mxu0 %vm1878_vm1, %v141_v58  ;;  %v2598_v59 = vsel %vm1892_vm7, 4294967295, %v2597_v59  ;;  %vm1908_vm1 = vmand %vm2540_vm12, %vm2602_vm3  ;;  %vm2608_vm3 = vcmp.lt.s32.totalorder %v1590_v8, 16 }
  0xab   :  { %v2604_v6 = vsel %vm1908_vm1, 4294967295, %v2603_v6  ;;  %vm2606_vm13 = vmmov %vm2605_vm11 }
  0xac   :  { %v185_v62 = vpop.permute.xlu0 %184  ;;  %v137_v5 = vpop.permute.xlu1 %136 }
  0xad   :  { %v189_v18 = vsel %vm2605_vm11, %v185_v62, %v187_v26  ;;  %v190_v19 = vsel %vm2606_vm13, %v183_v25, %v185_v62  ;;  %v142_v28 = vsel %vm2607_vm0, %v137_v5, %v131_v54  ;;  %vm2609_vm0 = vmmov %vm2608_vm3  ;;  %vm2610_vm11 = vcmp.ne.s32.totalorder %v1635_v30, 0 }
  0xae   :  { %1300 = vmatpush1.msk.msra.mxu0 %vm1892_vm7, %v142_v28  ;;  %1313 = vmatprep.subr.msk.mxu1 %vm1900_vm2, %v189_v18  ;;  %vm2611_vm13 = vcmp.ne.s32.totalorder %v1637_v31, 0  ;;  %vm2615_vm7 = vcmp.ne.s32.totalorder %v1643_v34, 0 }
  0xaf   :  { %1314 = vmatpush1.msk.msra.mxu1 %vm1908_vm1, %v190_v19  ;;  %1301 = vmatmul.mubr.msk.f32.vlgmr.msra.gmra.mxu0 %vm2541_vm10, %v330_v7  ;;  %vm1937_vm12 = vmand %vm2611_vm13, %vm2610_vm11  ;;  %vm2616_vm1 = vcmp.ne.s32.totalorder %v1645_v35, 0 }
  0xb0   :  { %v160_v29 = vpop.permute.xlu0 %159  ;;  %v135_v32 = vpop.permute.xlu1 %134  ;;  %421 = vmatprep.mubr.f32.mxu0 %v2545_v4  ;;  %vm2614_vm10 = vmmov %vm2611_vm13  ;;  %vm2630_vm13 = vcmp.lt.s32.totalorder %v1590_v8, 111 }
  0xb1   :  { %v164_v25 = vsel %vm2608_vm3, %v160_v29, %v162_v46  ;;  %v165_v26 = vsel %vm2609_vm0, %v158_v38, %v160_v29  ;;  %vm1947_vm2 = vmand %vm2616_vm1, %vm2615_vm7  ;;  %vm2619_vm3 = vcmp.lt.s32.totalorder %v1590_v8, 17 }
  0xb2   :  { %1315 = vmatprep.subr.msk.mxu1 %vm2614_vm10, %v164_v25  ;;  %v139_v38 = vsel %vm2619_vm3, %v135_v32, %v137_v5  ;;  %vm2620_vm0 = vmmov %vm2616_vm1  ;;  %vm2622_vm10 = vcmask 588800  }
  0xb3   :  { %1316 = vmatpush1.msk.msra.mxu1 %vm2620_vm0, %v165_v26  ;;  %vm2621_vm11 = vmmov %vm2619_vm3  ;;  %vm2632_vm0 = vcmp.lt.s32.totalorder %v1590_v8, 112 }
  0xb4   :  { %v140_v39 = vsel %vm2621_vm11, %v133_v57, %v135_v32  ;;  %1317 = vmatprep.subr.msk.mxu1 %vm1937_vm12, %v139_v38  ;;  %vm2623_vm1 = vmmov %vm2622_vm10  ;;  %vm2633_vm11 = vcmp.ne.s32.totalorder %v1596_v13, 15 }
  0xb5   :  { %1318 = vmatpush1.msk.msra.mxu1 %vm1947_vm2, %v140_v39  ;;  %vm2624_vm7 = vmmov %vm2623_vm1 }
  0xb6   :  { %1319 = vmatmul.mubr.msk.f32.vlgmr.msra.gmra.mxu1 %vm2622_vm10, %v330_v7  ;;  %vm2631_vm3 = vmmov %vm2630_vm13 }
  0xb7   :  { %498 = vmatprep.mubr.f32.mxu1 %v2545_v4  ;;  %vm2634_vm10 = vmmov %vm2632_vm0 }
  0xbd   :  { %v337_v46 = vpop.permute.xlu0 %336 }
 0x16f   :  { %v417_v45 = vpop.f32.mrf.mxu0 }
 0x170   :  { %v418_v54 = vadd.f32 %v417_v45, %v337_v46 }
 0x171   :  { %v419_v49 = vpop.f32.mrf.mxu0 }
 0x172   :  { %v420_v58 = vadd.f32 %v419_v49, %v337_v46 }
 0x174   :  { %v507_v5 = vadd.f32 %v420_v58, %v418_v54 }
 0x176   :  { %v494_v62 = vpop.f32.mrf.mxu1 }
 0x177   :  { %v495_v18 = vadd.f32 %v494_v62, %v337_v46 }
 0x178   :  { %v496_v19 = vpop.f32.mrf.mxu1 }
 0x179   :  { %v508_v57 = vadd.f32 %v507_v5, %v495_v18  ;;  %v497_v28 = vadd.f32 %v496_v19, %v337_v46  ;;  %v506_v46 = vld [vmem:[%s2500_s4] sm:$0xff] }
 0x17b   :  { %v509_v29 = vadd.f32 %v508_v57, %v497_v28 }
 0x17d   :  { %510 = vadd.xlane.f32.xlu1 %v509_v29 }
 0x206   :  { %v511_v32 = vpop.xlane.xlu1 %510 }
 0x207   :  { %v512_v25 = vmul.f32 0.001953125, %v511_v32 }
 0x209   :  { %v513_v26 = vsub.f32 %v418_v54, %v512_v25  ;;  %v514_v38 = vsub.f32 %v420_v58, %v512_v25  ;;  %v515_v7 = vsub.f32 %v495_v18, %v512_v25  ;;  %v516_v39 = vsub.f32 %v497_v28, %v512_v25  ;;  %v505_v54 = vld [vmem:[%s2499_s3] sm:$0xff] }
 0x20b   :  { %v517_v52 = vmul.f32 %v513_v26, %v513_v26  ;;  %v518_v16 = vmul.f32 %v514_v38, %v514_v38  ;;  %v519_v51 = vmul.f32 %v515_v7, %v515_v7  ;;  %v520_v45 = vmul.f32 %v516_v39, %v516_v39 }
 0x20d   :  { %v521_v22 = vadd.f32 %v518_v16, %v517_v52  ;;  %v2625_v16 = vmov 0.0  }
 0x20f   :  { %v522_v49 = vadd.f32 %v521_v22, %v519_v51 }
 0x211   :  { %v523_v4 = vadd.f32 %v522_v49, %v520_v45 }
 0x213   :  { %524 = vadd.xlane.f32.xlu0 %v523_v4  ;;  %v331_v4 = vld [vmem:[%s2497_s1 + $0x8] sm:$0xff] }
 0x214   :  { %1302 = vmatmul.mubr.msk.f32.gmra.mxu0 %vm2623_vm1, %v331_v4  ;;  %1320 = vmatmul.mubr.msk.f32.gmra.mxu1 %vm2624_vm7, %v331_v4  ;;  %vm2635_vm1 = vmmov %vm2631_vm3  ;;  %vm2638_vm7 = vnez %v2563_v44 }
 0x215   :  { %797 = vmatprep.mubr.f32.mxu0 %v2625_v16  ;;  %868 = vmatprep.mubr.f32.mxu1 %v2625_v16 }
 0x229   :  { %541 = vperm.xlu0 %1373, %v506_v46  }
 0x29c   :  { %v525_v62 = vpop.xlane.xlu0 %524 }
 0x29d   :  { %v526_v5 = vmul.f32 0.001953125, %v525_v62 }
 0x29f   :  { %v527_v19 = vadd.f32 1e-05, %v526_v5  ;;  %v2627_v5 = vsel %vm1839_vm14, %v1769_v10, %v1853_v48 }
 0x2a1   :  { %1375 = vrsqrt.f32 %v527_v19  ;;  %v2062_v19 = vmax.f32 %v1518_v2, %v2627_v5  ;;  %v2629_v2 = vsel %vm1843_vm9, %v1773_v11, %v1849_v47 }
 0x2a2   :  { %v2086_v10 = vmax.f32 %v1535_v3, %v2629_v2  ;;  %v724_v3 = vld [vmem:[%s2502_s6] sm:$0xff] }
 0x2a4   :  { %v542_v28 = vpop.permute.xlu0 %541 }
 0x2ae   :  { %v1376_v58 = vpop.eup %1375 }
 0x2af   :  { %v529_v18 = vmul.f32 %v1376_v58, %v505_v54 }
 0x2b1   :  { %532 = vperm.xlu1 %1374, %v529_v18  }
 0x32c   :  { %v533_v22 = vpop.permute.xlu1 %532 }
 0x32d   :  { %v535_v51 = vmul.f32 %v533_v22, %v513_v26  ;;  %v536_v52 = vmul.f32 %v533_v22, %v514_v38  ;;  %v537_v57 = vmul.f32 %v533_v22, %v515_v7  ;;  %v538_v46 = vmul.f32 %v533_v22, %v516_v39 }
 0x32e   :  { %v2626_v7 = vsel %vm1788_vm5, %v1720_v55, %v1796_v21 }
 0x32f   :  { %v544_v29 = vadd.f32 %v542_v28, %v535_v51  ;;  %v545_v32 = vadd.f32 %v542_v28, %v536_v52  ;;  %v546_v25 = vadd.f32 %v542_v28, %v537_v57  ;;  %v547_v26 = vadd.f32 %v542_v28, %v538_v46 }
 0x330   :  { %v2050_v39 = vmax.f32 %v1509_v1, %v2626_v7  ;;  %v2628_v1 = vsel %vm1758_vm15, %v1708_v50, %v1765_v9 }
 0x331   :  { %v1976_v45 = vmax.f32 %v544_v29, 0.0  ;;  %v1978_v49 = vmax.f32 %v545_v32, 0.0  ;;  %v1984_v62 = vmax.f32 %v546_v25, 0.0  ;;  %v1994_v38 = vmax.f32 %v547_v26, 0.0 }
 0x332   :  { %v2074_v55 = vmax.f32 %v1504_v0, %v2628_v1  ;;  %v333_v0 = vld [vmem:[%s2498_s2 + $0x8] sm:$0xff] }
 0x333   :  { %709 = vrot.lane.b32.xlu1 %v1978_v49, %s1419_s29  ;;  %707 = vrot.lane.b32.xlu0 %v1976_v45, %s1419_s29 }
 0x337   :  { %711 = vrot.lane.b32.xlu1 %v1984_v62, %s1419_s29  ;;  %695 = vrot.lane.b32.xlu0 %v1984_v62, %s1420_s15 }
 0x33b   :  { %693 = vrot.lane.b32.xlu1 %v1978_v49, %s1420_s15  ;;  %677 = vrot.lane.b32.xlu0 %v1978_v49, %s1421_s16 }
 0x33f   :  { %691 = vrot.lane.b32.xlu1 %v1976_v45, %s1420_s15  ;;  %713 = vrot.lane.b32.xlu0 %v1994_v38, %s1419_s29 }
 0x343   :  { %679 = vrot.lane.b32.xlu1 %v1984_v62, %s1421_s16  ;;  %661 = vrot.lane.b32.xlu0 %v1978_v49, %s1422_s19 }
 0x347   :  { %675 = vrot.lane.b32.xlu1 %v1976_v45, %s1421_s16  ;;  %697 = vrot.lane.b32.xlu0 %v1994_v38, %s1420_s15 }
 0x34b   :  { %663 = vrot.lane.b32.xlu1 %v1984_v62, %s1422_s19  ;;  %681 = vrot.lane.b32.xlu0 %v1994_v38, %s1421_s16 }
 0x34f   :  { %659 = vrot.lane.b32.xlu1 %v1976_v45, %s1422_s19  ;;  %645 = vrot.lane.b32.xlu0 %v1978_v49, %s1423_s0 }
 0x353   :  { %643 = vrot.lane.b32.xlu1 %v1976_v45, %s1423_s0  ;;  %649 = vrot.lane.b32.xlu0 %v1994_v38, %s1423_s0 }
 0x357   :  { %665 = vrot.lane.b32.xlu1 %v1994_v38, %s1422_s19  ;;  %629 = vrot.lane.b32.xlu0 %v1978_v49, %s1424_s20 }
 0x35b   :  { %627 = vrot.lane.b32.xlu1 %v1976_v45, %s1424_s20  ;;  %611 = vrot.lane.b32.xlu0 %v1976_v45, %s1425_s21 }
 0x35f   :  { %633 = vrot.lane.b32.xlu1 %v1994_v38, %s1424_s20  ;;  %647 = vrot.lane.b32.xlu0 %v1984_v62, %s1423_s0 }
 0x363   :  { %613 = vrot.lane.b32.xlu1 %v1978_v49, %s1425_s21  ;;  %595 = vrot.lane.b32.xlu0 %v1976_v45, %s1427_s22 }
 0x367   :  { %617 = vrot.lane.b32.xlu1 %v1994_v38, %s1425_s21  ;;  %631 = vrot.lane.b32.xlu0 %v1984_v62, %s1424_s20 }
 0x36b   :  { %597 = vrot.lane.b32.xlu1 %v1978_v49, %s1427_s22  ;;  %615 = vrot.lane.b32.xlu0 %v1984_v62, %s1425_s21 }
 0x36f   :  { %601 = vrot.lane.b32.xlu1 %v1994_v38, %s1427_s22  ;;  %942 = vrot.lane.b32.xlu0 %v2050_v39, %s1420_s15 }
 0x373   :  { %599 = vrot.lane.b32.xlu1 %v1984_v62, %s1427_s22  ;;  %946 = vrot.lane.b32.xlu0 %v2062_v19, %s1420_s15 }
 0x377   :  { %954 = vrot.lane.b32.xlu0 %v2050_v39, %s1425_s21  ;;  %944 = vrot.lane.b32.xlu1 %v2074_v55, %s1420_s15 }
 0x37b   :  { %958 = vrot.lane.b32.xlu0 %v2062_v19, %s1425_s21  ;;  %948 = vrot.lane.b32.xlu1 %v2086_v10, %s1420_s15 }
 0x37f   :  { %341 = vperm.xlu0 %1373, %v333_v0   ;;  %956 = vrot.lane.b32.xlu1 %v2074_v55, %s1425_s21 }
 0x383   :  { %960 = vrot.lane.b32.xlu1 %v2086_v10, %s1425_s21 }
 0x387   :  { %727 = vperm.xlu1 %1374, %v724_v3  }
 0x3a5   :  { %v710_v50 = vpop.permute.xlu1 %709  ;;  %v708_v9 = vpop.permute.xlu0 %707 }
 0x3a6   :  { %v717_v48 = vsel %vm2631_vm3, %v708_v9, %v710_v50  ;;  %vm2640_vm3 = vnez %v2557_v36 }
 0x3a9   :  { %v712_v11 = vpop.permute.xlu1 %711  ;;  %v696_v21 = vpop.permute.xlu0 %695 }
 0x3aa   :  { %v716_v47 = vsel %vm2630_vm13, %v710_v50, %v712_v11  ;;  %vm2639_vm13 = vcmp.lt.s32.totalorder %v1590_v8, 113 }
 0x3ab   :  { %1321 = vmatprep.subr.msk.mxu0 %vm1612_vm4, %v716_v47  ;;  %vm2636_vm4 = vmmov %vm2635_vm1 }
 0x3ac   :  { %1322 = vmatpush1.msk.msra.mxu0 %vm1621_vm6, %v717_v48  ;;  %vm2637_vm6 = vcmp.ne.s32.totalorder %v1600_v15, 15 }
 0x3ad   :  { %v694_v54 = vpop.permute.xlu1 %693  ;;  %v678_v58 = vpop.permute.xlu0 %677 }
 0x3ae   :  { %v700_v18 = vsel %vm2632_vm0, %v694_v54, %v696_v21  ;;  %vm2641_vm0 = vmmov %vm2639_vm13 }
 0x3af   :  { %1323 = vmatprep.subr.msk.mxu0 %vm2633_vm11, %v700_v18  ;;  %vm2642_vm11 = vmmov %vm2634_vm10 }
 0x3b1   :  { %v692_v4 = vpop.permute.xlu1 %691  ;;  %v714_v22 = vpop.permute.xlu0 %713 }
 0x3b2   :  { %v701_v51 = vsel %vm2634_vm10, %v692_v4, %v694_v54  ;;  %v715_v20 = vsel %vm2635_vm1, %v712_v11, %v714_v22  ;;  %v718_v23 = vsel %vm2636_vm4, %v714_v22, %v708_v9  ;;  %vm2645_vm1 = vcmp.ne.s32.totalorder %v1637_v31, 15 }
 0x3b3   :  { %1324 = vmatpush1.msk.msra.mxu0 %vm2637_vm6, %v701_v51  ;;  %1338 = vmatprep.subr.msk.mxu1 %vm1681_vm8, %v718_v23  ;;  %vm2643_vm8 = vmmov %vm2634_vm10  ;;  %vm2644_vm10 = vnez %v2559_v40  ;;  %vm2646_vm4 = vcmp.ne.s32.totalorder %v1645_v35, 15  ;;  %vm2647_vm6 = vcmp.lt.s32.totalorder %v1590_v8, 127 }
 0x3b4   :  { %1339 = vmatpush1.msk.msra.mxu1 %vm2638_vm7, %v715_v20  ;;  %vm2648_vm7 = vmmov %vm2641_vm0 }
 0x3b5   :  { %v680_v52 = vpop.permute.xlu1 %679  ;;  %v662_v57 = vpop.permute.xlu0 %661 }
 0x3b6   :  { %v684_v28 = vsel %vm2639_vm13, %v678_v58, %v680_v52  ;;  %vm2649_vm13 = vmmov %vm2641_vm0 }
 0x3b7   :  { %1325 = vmatprep.subr.msk.mxu0 %vm2640_vm3, %v684_v28  ;;  %vm2650_vm3 = vcmp.ne.s32.totalorder %v1594_v12, 15 }
 0x3b9   :  { %v676_v29 = vpop.permute.xlu1 %675  ;;  %v698_v32 = vpop.permute.xlu0 %697 }
 0x3ba   :  { %v685_v25 = vsel %vm2641_vm0, %v676_v29, %v678_v58  ;;  %v699_v41 = vsel %vm2642_vm11, %v696_v21, %v698_v32  ;;  %v702_v44 = vsel %vm2643_vm8, %v698_v32, %v692_v4  ;;  %vm2651_vm0 = vnez %v2566_v56  ;;  %vm2653_vm8 = vmmov %vm2647_vm6 }
 0x3bb   :  { %1326 = vmatpush1.msk.msra.mxu0 %vm2644_vm10, %v685_v25  ;;  %1340 = vmatprep.subr.msk.mxu1 %vm2645_vm1, %v702_v44  ;;  %vm2652_vm11 = vnez %v2568_v60  ;;  %vm2654_vm10 = vcmp.ne.s32.totalorder %v1598_v14, 15  ;;  %vm2655_vm1 = vcmp.lt.s32.totalorder %v1590_v8, 1  ;;  %v723_v25 = vld [vmem:[%s2501_s5] sm:$0xff] }
 0x3bc   :  { %1341 = vmatpush1.msk.msra.mxu1 %vm2646_vm4, %v699_v41  ;;  %vm2656_vm4 = vmmov %vm2655_vm1 }
 0x3bd   :  { %v664_v36 = vpop.permute.xlu1 %663  ;;  %v682_v46 = vpop.permute.xlu0 %681 }
 0x3be   :  { %v668_v26 = vsel %vm2647_vm6, %v662_v57, %v664_v36  ;;  %v683_v7 = vsel %vm2648_vm7, %v680_v52, %v682_v46  ;;  %v686_v5 = vsel %vm2649_vm13, %v682_v46, %v676_v29  ;;  %vm2657_vm6 = vcmp.ne.s32.totalorder %v1594_v12, 0  ;;  %vm2659_vm13 = vmmov %vm2653_vm8 }
 0x3bf   :  { %1327 = vmatprep.subr.msk.mxu0 %vm2650_vm3, %v668_v26  ;;  %1342 = vmatprep.subr.msk.mxu1 %vm2651_vm0, %v686_v5  ;;  %vm2658_vm7 = vcmp.ne.s32.totalorder %v1598_v14, 0  ;;  %vm2660_vm3 = vmmov %vm2653_vm8  ;;  %vm2661_vm0 = vcmp.ne.s32.totalorder %v1635_v30, 15 }
 0x3c0   :  { %1343 = vmatpush1.msk.msra.mxu1 %vm2652_vm11, %v683_v7  ;;  %vm2662_vm11 = vcmp.ne.s32.totalorder %v1643_v34, 15  ;;  %v71_v7 = vand.u32 1, %v1596_v13 }
 0x3c1   :  { %v660_v40 = vpop.permute.xlu1 %659  ;;  %v646_v1 = vpop.permute.xlu0 %645 }
 0x3c2   :  { %v669_v2 = vsel %vm2653_vm8, %v660_v40, %v662_v57  ;;  %vm2663_vm8 = vcmp.lt.s32.totalorder %v1590_v8, 15 }
 0x3c3   :  { %1328 = vmatpush1.msk.msra.mxu0 %vm2654_vm10, %v669_v2  ;;  %vm2664_vm10 = vnez %v2577_v24 }
 0x3c4   :  { %755 = vmatprep.subr.mxu0 %v1978_v49 }
 0x3c5   :  { %v644_v0 = vpop.permute.xlu1 %643  ;;  %756 = vmatpush1.msra.mxu0 %v1976_v45  ;;  %v650_v3 = vpop.permute.xlu0 %649 }
 0x3c6   :  { %v653_v56 = vsel %vm2655_vm1, %v644_v0, %v646_v1  ;;  %v654_v60 = vsel %vm2656_vm4, %v650_v3, %v644_v0  ;;  %vm2665_vm1 = vmmov %vm2663_vm8 }
 0x3c7   :  { %1329 = vmatprep.subr.msk.mxu0 %vm2657_vm6, %v653_v56  ;;  %vm2666_vm6 = vmmov %vm2656_vm4  ;;  %v2692_v56 = vmov 0 }
 0x3c8   :  { %1330 = vmatpush1.msk.msra.mxu0 %vm2658_vm7, %v654_v60  ;;  %vm2667_vm7 = vnez %v2581_v27 }
 0x3c9   :  { %v666_v50 = vpop.permute.xlu1 %665  ;;  %v630_v9 = vpop.permute.xlu0 %629 }
 0x3ca   :  { %v667_v49 = vsel %vm2659_vm13, %v664_v36, %v666_v50  ;;  %v670_v45 = vsel %vm2660_vm3, %v666_v50, %v660_v40  ;;  %vm2668_vm13 = vcmp.ne.s32.totalorder %v1635_v30, 0  ;;  %vm2669_vm3 = vcmp.ne.s32.totalorder %v1643_v34, 0 }
 0x3cb   :  { %1344 = vmatprep.subr.msk.mxu1 %vm2661_vm0, %v670_v45  ;;  %vm2670_vm0 = vcmp.lt.s32.totalorder %v1590_v8, 16  ;;  %v72_v40 = vand.u32 1, %v1645_v35 }
 0x3cc   :  { %1345 = vmatpush1.msk.msra.mxu1 %vm2662_vm11, %v667_v49  ;;  %vm2671_vm11 = vcmp.ne.s32.totalorder %v1596_v13, 0  ;;  %v2697_v49 = vmov 0 }
 0x3cd   :  { %v628_v11 = vpop.permute.xlu1 %627  ;;  %826 = vmatprep.subr.mxu1 %v1994_v38  ;;  %v612_v21 = vpop.permute.xlu0 %611 }
 0x3ce   :  { %v637_v47 = vsel %vm2663_vm8, %v628_v11, %v630_v9  ;;  %827 = vmatpush1.msra.mxu1 %v1984_v62  ;;  %vm2672_vm8 = vmmov %vm2670_vm0 }
 0x3cf   :  { %1331 = vmatprep.subr.msk.mxu0 %vm2664_vm10, %v637_v47  ;;  %vm2673_vm10 = vmmov %vm2665_vm1 }
 0x3d1   :  { %v634_v48 = vpop.permute.xlu1 %633  ;;  %v648_v54 = vpop.permute.xlu0 %647 }
 0x3d2   :  { %v638_v58 = vsel %vm2665_vm1, %v634_v48, %v628_v11  ;;  %v651_v18 = vsel %vm2656_vm4, %v648_v54, %v650_v3  ;;  %v652_v38 = vsel %vm2666_vm6, %v646_v1, %v648_v54  ;;  %vm2674_vm4 = vcmp.ne.s32.totalorder %v1600_v15, 0  ;;  %v423_v11 = vpop.f32.mrf.mxu0 }
 0x3d3   :  { %1332 = vmatpush1.msk.msra.mxu0 %vm2667_vm7, %v638_v58  ;;  %1346 = vmatprep.subr.msk.mxu1 %vm2668_vm13, %v651_v18  ;;  %vm2675_vm6 = vnez %v2601_v61  ;;  %vm2676_vm7 = vnez %v2604_v6  ;;  %vm2677_vm13 = vcmp.lt.s32.totalorder %v1590_v8, 17  ;;  %v2688_v1 = vmov 0 }
 0x3d4   :  { %1347 = vmatpush1.msk.msra.mxu1 %vm2669_vm3, %v652_v38  ;;  %vm2678_vm3 = vmmov %vm2670_vm0 }
 0x3d5   :  { %v614_v24 = vpop.permute.xlu1 %613  ;;  %v596_v62 = vpop.permute.xlu0 %595 }
 0x3d6   :  { %v621_v4 = vsel %vm2670_vm0, %v612_v21, %v614_v24 }
 0x3d7   :  { %1333 = vmatprep.subr.msk.mxu0 %vm2671_vm11, %v621_v4  ;;  %vm2679_vm11 = vnez %v2594_v53  ;;  %v500_v4 = vpop.f32.mrf.mxu1 }
 0x3d9   :  { %v618_v22 = vpop.permute.xlu1 %617  ;;  %v632_v51 = vpop.permute.xlu0 %631 }
 0x3da   :  { %v622_v27 = vsel %vm2672_vm8, %v618_v22, %v612_v21  ;;  %v635_v20 = vsel %vm2673_vm10, %v632_v51, %v634_v48  ;;  %v636_v23 = vsel %vm2665_vm1, %v630_v9, %v632_v51  ;;  %vm2680_vm8 = vcmp.ne.s32.totalorder %v1637_v31, 0  ;;  %vm2682_vm1 = vmmov %vm2677_vm13 }
 0x3db   :  { %1334 = vmatpush1.msk.msra.mxu0 %vm2674_vm4, %v622_v27  ;;  %1348 = vmatprep.subr.msk.mxu1 %vm2675_vm6, %v635_v20  ;;  %vm2681_vm10 = vcmp.ne.s32.totalorder %v1645_v35, 0  ;;  %vm2683_vm4 = vnez %v2598_v59  ;;  %vm2684_vm6 = vcmask 588800   ;;  %v982_v27 = vld [vmem:[%s2507_s11] sm:$0xff] }
 0x3dc   :  { %1349 = vmatpush1.msk.msra.mxu1 %vm2676_vm7, %v636_v23  ;;  %vm2685_vm7 = vmmov %vm2682_vm1 }
 0x3dd   :  { %v598_v52 = vpop.permute.xlu1 %597  ;;  %v616_v57 = vpop.permute.xlu0 %615 }
 0x3de   :  { %v605_v28 = vsel %vm2677_vm13, %v596_v62, %v598_v52  ;;  %v619_v29 = vsel %vm2678_vm3, %v616_v57, %v618_v22  ;;  %v620_v32 = vsel %vm2670_vm0, %v614_v24, %v616_v57  ;;  %vm2686_vm13 = vmmov %vm2682_vm1  ;;  %vm2243_vm0 = vcmp.eq.s32.totalorder %v71_v7, 0  ;;  %v425_v22 = vpop.f32.mrf.mxu0 }
 0x3df   :  { %1335 = vmatprep.subr.msk.mxu0 %vm2679_vm11, %v605_v28  ;;  %1350 = vmatprep.subr.msk.mxu1 %vm2680_vm8, %v619_v29  ;;  %vm2687_vm3 = vmmov %vm2684_vm6  ;;  %v2689_v1 = vsel %vm2243_vm0, 4294967295, %v2688_v1  ;;  %vm2253_vm11 = vcmp.eq.s32.totalorder %v72_v40, 0  ;;  %v502_v28 = vpop.f32.mrf.mxu1 }
 0x3e0   :  { %1351 = vmatpush1.msk.msra.mxu1 %vm2681_vm10, %v620_v32  ;;  %v2693_v56 = vsel %vm2253_vm11, 4294967295, %v2692_v56  ;;  %vm2261_vm10 = vcmp.eq.s32.totalorder %v70_v33, 0 }
 0x3e1   :  { %v602_v61 = vpop.permute.xlu1 %601  ;;  %v943_v6 = vpop.permute.xlu0 %942 }
 0x3e2   :  { %v606_v41 = vsel %vm2682_vm1, %v602_v61, %v596_v62  ;;  %vm2265_vm1 = vcmp.eq.s32.totalorder %v73_v37, 0 }
 0x3e3   :  { %1336 = vmatpush1.msk.msra.mxu0 %vm2683_vm4, %v606_v41  ;;  %v2698_v49 = vsel %vm2265_vm1, 4294967295, %v2697_v49 }
 0x3e4   :  { %1337 = vmatmul.mubr.msk.f32.vlgmr.msra.gmra.mxu0 %vm2684_vm6, %v723_v25 }
 0x3e5   :  { %v600_v53 = vpop.permute.xlu1 %599  ;;  %1057 = vmatprep.mubr.f32.mxu0 %v2625_v16  ;;  %v947_v46 = vpop.permute.xlu0 %946 }
 0x3e6   :  { %v603_v44 = vsel %vm2685_vm7, %v600_v53, %v602_v61  ;;  %v604_v36 = vsel %vm2686_vm13, %v598_v52, %v600_v53 }
 0x3e7   :  { %1352 = vmatprep.subr.msk.mxu1 %vm1937_vm12, %v603_v44  ;;  %vm2691_vm12 = vcmp.lt.s32.totalorder %v1590_v8, 16 }
 0x3e8   :  { %1353 = vmatpush1.msk.msra.mxu1 %vm1947_vm2, %v604_v36  ;;  %vm2690_vm2 = vcmp.lt.s32.totalorder %v1590_v8, 112  ;;  %vm2694_vm8 = vmmov %vm2691_vm12 }
 0x3e9   :  { %1354 = vmatmul.mubr.msk.f32.vlgmr.msra.gmra.mxu1 %vm2687_vm3, %v723_v25  ;;  %v945_v59 = vpop.permute.xlu1 %944  ;;  %v955_v26 = vpop.permute.xlu0 %954  ;;  %vm2699_vm4 = vmmov %vm2690_vm2 }
 0x3ea   :  { %1128 = vmatprep.mubr.f32.mxu1 %v2625_v16  ;;  %v951_v0 = vsel %vm2690_vm2, %v945_v59, %v947_v46  ;;  %v952_v21 = vsel %vm2699_vm4, %v943_v6, %v945_v59  ;;  %vm2700_vm6 = vmmov %vm2690_vm2 }
 0x3eb   :  { %vm2701_vm7 = vmmov %vm2690_vm2  ;;  %vm989_vm2 = vcmask 64512  }
 0x3ec   :  { %vm2702_vm13 = vmmov %vm2694_vm8 }
 0x3ed   :  { %v949_v5 = vpop.permute.xlu1 %948  ;;  %v959_v3 = vpop.permute.xlu0 %958  ;;  %vm2703_vm3 = vmmov %vm2694_vm8 }
 0x3ee   :  { %v950_v47 = vsel %vm2700_vm6, %v947_v46, %v949_v5  ;;  %v953_v54 = vsel %vm2701_vm7, %v949_v5, %v943_v6  ;;  %v983_v6 = vld [vmem:[%s2508_s12] sm:$0xff]  ;;  %vm2707_vm6 = vcmp.ne.s32.totalorder %v1598_v14, 15  ;;  %vm2708_vm7 = vcmp.ne.s32.totalorder %v1598_v14, 0 }
 0x3f1   :  { %v957_v2 = vpop.permute.xlu1 %956 }
 0x3f2   :  { %v964_v16 = vsel %vm2691_vm12, %v955_v26, %v957_v2  ;;  %v963_v60 = vsel %vm2694_vm8, %v957_v2, %v959_v3  ;;  %vm2704_vm12 = vcmp.lt.s32.totalorder %v1590_v8, 1 }
 0x3f3   :  { %v975_v50 = vsel %vm2243_vm0, %v951_v0, %v964_v16  ;;  %v976_v58 = vsel %vm2253_vm11, %v950_v47, %v963_v60  ;;  %vm2705_vm8 = vmmov %vm2704_vm12  ;;  %vm2718_vm11 = vmmov 1  }
 0x3f4   :  { %v979_v45 = vmax.f32 %v2074_v55, %v975_v50  ;;  %v980_v20 = vmax.f32 %v2062_v19, %v976_v58  ;;  %vm2706_vm4 = vmmov %vm2705_vm8 }
 0x3f5   :  { %v961_v48 = vpop.permute.xlu1 %960 }
 0x3f6   :  { %v962_v18 = vsel %vm2702_vm13, %v959_v3, %v961_v48  ;;  %v965_v55 = vsel %vm2703_vm3, %v961_v48, %v955_v26  ;;  %1023 = vmatprep.subr.mxu0 %v979_v45  ;;  %vm94_vm13 = vmand %vm2708_vm7, %vm2707_vm6  ;;  %vm2547_vm3 = vmmov 1   ;;  %vm2712_vm6 = vcmp.ne.s32.totalorder %v1635_v30, 0 }
 0x3f7   :  { %v974_v38 = vsel %vm2261_vm10, %v952_v21, %v965_v55  ;;  %v977_v24 = vsel %vm2265_vm1, %v953_v54, %v962_v18 }
 0x3f8   :  { %v978_v62 = vmax.f32 %v2050_v39, %v974_v38  ;;  %v981_v51 = vmax.f32 %v2086_v10, %v977_v24 }
 0x3fa   :  { %v342_v23 = vpop.permute.xlu0 %341  ;;  %1024 = vmatpush1.msra.mxu0 %v978_v62  ;;  %1094 = vmatprep.subr.mxu1 %v981_v51 }
 0x3fb   :  { %v424_v52 = vadd.f32 %v423_v11, %v342_v23  ;;  %v426_v57 = vadd.f32 %v425_v22, %v342_v23  ;;  %1355 = vmatmul.mubr.msk.f32.vlgmr.msra.gmra.mxu0 %vm989_vm2, %v982_v27  ;;  %1095 = vmatpush1.msra.mxu1 %v980_v20  ;;  %v501_v39 = vadd.f32 %v500_v4, %v342_v23 }
 0x3fc   :  { %1356 = vmatmul.mubr.msk.f32.vlgmr.msra.gmra.mxu1 %vm989_vm2, %v982_v27  ;;  %v503_v32 = vadd.f32 %v502_v28, %v342_v23  ;;  %vm98_vm2 = vmxor %vm94_vm13, %vm2547_vm3  ;;  %vm2713_vm13 = vcmp.ne.s32.totalorder %v1594_v12, 15  ;;  %vm2717_vm3 = vcmp.ne.s32.totalorder %v1643_v34, 0 }
 0x3fd   :  { %v554_v29 = vadd.f32 %v426_v57, %v424_v52 }
 0x3ff   :  { %v555_v10 = vadd.f32 %v554_v29, %v501_v39 }
 0x401   :  { %v556_v61 = vadd.f32 %v555_v10, %v503_v32 }
 0x402   :  { %v728_v36 = vpop.permute.xlu1 %727 }
 0x403   :  { %557 = vadd.xlane.f32.xlu0 %v556_v61 }
 0x419   :  { %986 = vperm.xlu0 %1373, %v983_v6  }
 0x48c   :  { %v558_v19 = vpop.xlane.xlu0 %557 }
 0x48d   :  { %v559_v25 = vmul.f32 0.001953125, %v558_v19 }
 0x48f   :  { %v2295_v41 = vsub.f32 %v424_v52, %v559_v25  ;;  %v2297_v53 = vsub.f32 %v426_v57, %v559_v25  ;;  %v2303_v40 = vsub.f32 %v501_v39, %v559_v25  ;;  %v2305_v50 = vsub.f32 %v503_v32, %v559_v25 }
 0x491   :  { %v564_v59 = vmul.f32 %v2295_v41, %v2295_v41  ;;  %v565_v26 = vmul.f32 %v2297_v53, %v2297_v53  ;;  %v566_v45 = vmul.f32 %v2303_v40, %v2303_v40  ;;  %v567_v47 = vmul.f32 %v2305_v50, %v2305_v50 }
 0x493   :  { %v568_v0 = vadd.f32 %v565_v26, %v564_v59 }
 0x494   :  { %v987_v54 = vpop.permute.xlu0 %986 }
 0x495   :  { %v569_v21 = vadd.f32 %v568_v0, %v566_v45 }
 0x497   :  { %v570_v48 = vadd.f32 %v569_v21, %v567_v47 }
 0x4a4   :  { %v799_v44 = vpop.f32.mrf.mxu0 }
 0x4a5   :  { %v800_v7 = vadd.f32 %v799_v44, %v728_v36 }
 0x4a6   :  { %v801_v46 = vpop.f32.mrf.mxu0 }
 0x4a7   :  { %v802_v5 = vadd.f32 %v801_v46, %v728_v36 }
 0x4a9   :  { %v877_v33 = vadd.f32 %v802_v5, %v800_v7  ;;  %v870_v37 = vpop.f32.mrf.mxu1 }
 0x4aa   :  { %v871_v2 = vadd.f32 %v870_v37, %v728_v36 }
 0x4ab   :  { %v872_v3 = vpop.f32.mrf.mxu1 }
 0x4ac   :  { %v878_v16 = vadd.f32 %v877_v33, %v871_v2  ;;  %v873_v60 = vadd.f32 %v872_v3, %v728_v36  ;;  %v876_v36 = vld [vmem:[%s2504_s8] sm:$0xff] }
 0x4ae   :  { %v879_v11 = vadd.f32 %v878_v16, %v873_v60 }
 0x4b0   :  { %880 = vadd.xlane.f32.xlu1 %v879_v11 }
 0x4b4   :  { %571 = vadd.xlane.f32.xlu1 %v570_v48 }
 0x4bb   :  { %v1059_v58 = vpop.f32.mrf.mxu0 }
 0x4bc   :  { %v1060_v18 = vadd.f32 %v1059_v58, %v987_v54  ;;  %v1130_v55 = vpop.f32.mrf.mxu1 }
 0x4bd   :  { %v1131_v38 = vadd.f32 %v1130_v55, %v987_v54  ;;  %v1061_v24 = vpop.f32.mrf.mxu0 }
 0x4be   :  { %v1357_v62 = vmul.f32 -1.442695, %v1060_v18  ;;  %v1062_v4 = vadd.f32 %v1061_v24, %v987_v54  ;;  %v1132_v22 = vpop.f32.mrf.mxu1  ;;  %v552_v24 = vld [vmem:[%s2505_s9] sm:$0xff] }
 0x4bf   :  { %v1359_v51 = vmul.f32 -1.442695, %v1131_v38  ;;  %v1133_v27 = vadd.f32 %v1132_v22, %v987_v54 }
 0x4c0   :  { %1377 = vpow2.f32 %v1357_v62  ;;  %v1358_v20 = vmul.f32 -1.442695, %v1062_v4 }
 0x4c1   :  { %1379 = vpow2.f32 %v1359_v51  ;;  %v1360_v23 = vmul.f32 -1.442695, %v1133_v27  ;;  %v553_v51 = vld [vmem:[%s2506_s10] sm:$0xff] }
 0x4c2   :  { %1381 = vpow2.f32 %v1358_v20 }
 0x4c3   :  { %1383 = vpow2.f32 %v1360_v23 }
 0x4cd   :  { %v1378_v52 = vpop.eup %1377 }
 0x4ce   :  { %v1380_v57 = vpop.eup %1379  ;;  %v1147_v28 = vadd.f32 1.0, %v1378_v52 }
 0x4cf   :  { %v1382_v39 = vpop.eup %1381  ;;  %v1149_v29 = vadd.f32 1.0, %v1380_v57 }
 0x4d0   :  { %1385 = vrcp.f32 %v1147_v28  ;;  %v1148_v32 = vadd.f32 1.0, %v1382_v39  ;;  %v1384_v10 = vpop.eup %1383 }
 0x4d1   :  { %1387 = vrcp.f32 %v1149_v29  ;;  %v1150_v61 = vadd.f32 1.0, %v1384_v10 }
 0x4d2   :  { %1389 = vrcp.f32 %v1148_v32 }
 0x4d3   :  { %1391 = vrcp.f32 %v1150_v61 }
 0x4dd   :  { %v1386_v6 = vpop.eup %1385 }
 0x4de   :  { %v2311_v19 = vpop.eup %1387  ;;  %1159 = vrot.lane.b32.xlu1 %v1386_v6, %s1423_s0  ;;  %v1199_v39 = vmul.f32 0.75, %v1386_v6 }
 0x4df   :  { %1163 = vrot.lane.b32.xlu0 %v2311_v19, %s1423_s0  ;;  %v2316_v25 = vpop.eup %1389 }
 0x4e0   :  { %v2321_v44 = vpop.eup %1391 }
 0x4e1   :  { %v1202_v63 = vmul.f32 0.75, %v2321_v44 }
 0x4e2   :  { %1171 = vrot.lane.b32.xlu1 %v1386_v6, %s1422_s19 }
 0x4e3   :  { %1161 = vrot.lane.b32.xlu0 %v2316_v25, %s1423_s0 }
 0x4e7   :  { %1165 = vrot.lane.b32.xlu0 %v2321_v44, %s1423_s0 }
 0x4eb   :  { %1173 = vrot.lane.b32.xlu0 %v2316_v25, %s1422_s19 }
 0x4ef   :  { %1177 = vrot.lane.b32.xlu0 %v2321_v44, %s1422_s19 }
 0x4f3   :  { %911 = vperm.xlu0 %1373, %v876_v36  }
 0x539   :  { %v881_v46 = vpop.xlane.xlu1 %880 }
 0x53a   :  { %v882_v59 = vmul.f32 0.001953125, %v881_v46 }
 0x53c   :  { %v2332_v26 = vsub.f32 %v800_v7, %v882_v59  ;;  %v2334_v33 = vsub.f32 %v802_v5, %v882_v59  ;;  %v2336_v37 = vsub.f32 %v871_v2, %v882_v59  ;;  %v2338_v3 = vsub.f32 %v873_v60, %v882_v59 }
 0x53d   :  { %v572_v0 = vpop.xlane.xlu1 %571 }
 0x53e   :  { %v887_v16 = vmul.f32 %v2332_v26, %v2332_v26  ;;  %v888_v45 = vmul.f32 %v2334_v33, %v2334_v33  ;;  %v889_v11 = vmul.f32 %v2336_v37, %v2336_v37  ;;  %v573_v47 = vmul.f32 0.001953125, %v572_v0 }
 0x53f   :  { %v890_v7 = vmul.f32 %v2338_v3, %v2338_v3 }
 0x540   :  { %v891_v21 = vadd.f32 %v888_v45, %v887_v16  ;;  %v574_v48 = vadd.f32 1e-05, %v573_v47  ;;  %v1201_v47 = vmul.f32 0.75, %v2311_v19 }
 0x542   :  { %v892_v5 = vadd.f32 %v891_v21, %v889_v11  ;;  %1393 = vrsqrt.f32 %v574_v48  ;;  %v1200_v21 = vmul.f32 0.75, %v2316_v25 }
 0x544   :  { %v893_v2 = vadd.f32 %v892_v5, %v890_v7 }
 0x546   :  { %894 = vadd.xlane.f32.xlu1 %v893_v2 }
 0x54f   :  { %v1394_v18 = vpop.eup %1393 }
 0x550   :  { %v1160_v54 = vpop.permute.xlu1 %1159  ;;  %v576_v4 = vmul.f32 %v1394_v18, %v552_v24 }
 0x551   :  { %v1164_v60 = vpop.permute.xlu0 %1163 }
 0x554   :  { %v1172_v27 = vpop.permute.xlu1 %1171 }
 0x555   :  { %v1162_v58 = vpop.permute.xlu0 %1161 }
 0x556   :  { %v1168_v55 = vsel %vm2704_vm12, %v1162_v58, %v1164_v60  ;;  %v1169_v38 = vsel %vm2705_vm8, %v1160_v54, %v1162_v58  ;;  %vm2709_vm12 = vmmov %vm2706_vm4  ;;  %vm2710_vm8 = vcmp.lt.s32.totalorder %v1590_v8, 127 }
 0x557   :  { %1175 = vrot.lane.b32.xlu1 %v2311_v19, %s1422_s19 }
 0x559   :  { %v1166_v62 = vpop.permute.xlu0 %1165 }
 0x55a   :  { %v1167_v22 = vsel %vm2706_vm4, %v1164_v60, %v1166_v62  ;;  %v1170_v23 = vsel %vm2709_vm12, %v1166_v62, %v1160_v54  ;;  %vm2711_vm4 = vcmp.ne.s32.totalorder %v1635_v30, 15 }
 0x55b   :  { %579 = vperm.xlu1 %1374, %v576_v4   ;;  %vm97_vm7 = vmand %vm2712_vm6, %vm2711_vm4 }
 0x55c   :  { %vm101_vm0 = vmxor %vm97_vm7, %vm2718_vm11 }
 0x55d   :  { %v1174_v20 = vpop.permute.xlu0 %1173 }
 0x55e   :  { %v1181_v52 = vsel %vm2710_vm8, %v1172_v27, %v1174_v20 }
 0x55f   :  { %v1183_v14 = vsel %vm1788_vm5, %v1170_v23, %v1181_v52  ;;  %588 = vperm.xlu1 %1374, %v553_v51   ;;  %vm2714_vm5 = vcmp.ne.s32.totalorder %v1594_v12, 0 }
 0x560   :  { %v1195_v57 = vsel %vm98_vm2, %v1386_v6, %v1183_v14  ;;  %vm95_vm12 = vmand %vm2714_vm5, %vm2713_vm13 }
 0x561   :  { %v1203_v28 = vmul.f32 0.25, %v1195_v57  ;;  %v1178_v32 = vpop.permute.xlu0 %1177  ;;  %vm2715_vm2 = vmmov %vm2710_vm8  ;;  %vm2716_vm8 = vcmp.ne.s32.totalorder %v1643_v34, 15 }
 0x562   :  { %v1182_v17 = vsel %vm2715_vm2, %v1178_v32, %v1172_v27  ;;  %vm96_vm1 = vmand %vm2717_vm3, %vm2716_vm8  ;;  %vm2725_vm3 = vcmp.ne.s32.totalorder %v1596_v13, 0 }
 0x563   :  { %v2373_v29 = vadd.f32 %v1203_v28, %v1199_v39  ;;  %vm99_vm4 = vmxor %vm95_vm12, %vm2718_vm11  ;;  %v1186_v30 = vsel %vm1843_vm9, %v1167_v22, %v1182_v17 }
 0x564   :  { %vm100_vm6 = vmxor %vm96_vm1, %vm2718_vm11  ;;  %v1198_v0 = vsel %vm101_vm0, %v2321_v44, %v1186_v30  ;;  %vm2723_vm0 = vcmp.lt.s32.totalorder %v1590_v8, 112  ;;  %vm2724_vm1 = vcmp.ne.s32.totalorder %v1596_v13, 15 }
 0x565   :  { %1211 = vrot.lane.b32.xlu1 %v2373_v29, %s1425_s21  ;;  %vm2719_vm13 = vmmov %vm2715_vm2  ;;  %v1206_v7 = vmul.f32 0.25, %v1198_v0 }
 0x566   :  { %vm2720_vm5 = vmmov %vm2715_vm2  ;;  %vm2727_vm2 = vcmp.lt.s32.totalorder %v1590_v8, 16 }
 0x567   :  { %v2415_v42 = vadd.f32 %v1206_v7, %v1202_v63  ;;  %vm103_vm7 = vmand %vm2725_vm3, %vm2724_vm1 }
 0x568   :  { %vm2726_vm12 = vmmov %vm2723_vm0 }
 0x569   :  { %vm2728_vm8 = vmmov %vm2727_vm2 }
 0x56a   :  { %vm2736_vm3 = vmmov %vm2727_vm2 }
 0x56e   :  { %v912_v54 = vpop.permute.xlu0 %911 }
 0x5cf   :  { %v895_v10 = vpop.xlane.xlu1 %894 }
 0x5d0   :  { %v896_v61 = vmul.f32 0.001953125, %v895_v10 }
 0x5d2   :  { %v897_v6 = vadd.f32 1e-05, %v896_v61 }
 0x5d3   :  { %v1176_v12 = vpop.permute.xlu1 %1175 }
 0x5d4   :  { %v1179_v36 = vsel %vm2719_vm13, %v1176_v12, %v1178_v32  ;;  %v1180_v46 = vsel %vm2720_vm5, %v1174_v20, %v1176_v12  ;;  %1395 = vrsqrt.f32 %v897_v6  ;;  %vm2729_vm13 = vnez %v2689_v1 }
 0x5d5   :  { %v1184_v34 = vsel %vm1758_vm15, %v1169_v38, %v1180_v46  ;;  %v1185_v59 = vsel %vm1839_vm14, %v1168_v55, %v1179_v36  ;;  %vm2721_vm15 = vcmp.ne.s32.totalorder %v1600_v15, 15  ;;  %vm2722_vm14 = vcmp.ne.s32.totalorder %v1600_v15, 0 }
 0x5d6   :  { %v1196_v43 = vsel %vm99_vm4, %v2316_v25, %v1184_v34  ;;  %v1197_v16 = vsel %vm100_vm6, %v2311_v19, %v1185_v59  ;;  %v875_v25 = vld [vmem:[%s2503_s7] sm:$0xff]  ;;  %vm102_vm9 = vmand %vm2722_vm14, %vm2721_vm15  ;;  %vm2731_vm5 = vcmp.ne.s32.totalorder %v1645_v35, 0  ;;  %vm2734_vm14 = vcmp.ne.s32.totalorder %v1637_v31, 15  ;;  %s1430_s7 = smov [#allocation2]  }
 0x5d7   :  { %v1204_v45 = vmul.f32 0.25, %v1196_v43  ;;  %v1205_v11 = vmul.f32 0.25, %v1197_v16  ;;  %v580_v44 = vpop.permute.xlu1 %579  ;;  %vm106_vm4 = vmxor %vm102_vm9, %vm2718_vm11  ;;  %vm2735_vm9 = vcmp.ne.s32.totalorder %v1637_v31, 0 }
 0x5d8   :  { %vm107_vm6 = vmxor %vm103_vm7, %vm2718_vm11  ;;  %v582_v23 = vmul.f32 %v580_v44, %v2295_v41  ;;  %v583_v52 = vmul.f32 %v580_v44, %v2297_v53  ;;  %v584_v17 = vmul.f32 %v580_v44, %v2303_v40  ;;  %v585_v1 = vmul.f32 %v580_v44, %v2305_v50 }
 0x5d9   :  { %v1208_v5 = vadd.f32 %v1204_v45, %v1200_v21  ;;  %v2409_v2 = vadd.f32 %v1205_v11, %v1201_v47  ;;  %v1251_v40 = vmul.f32 0.75, %v2373_v29  ;;  %vm2737_vm7 = vmmov %vm2727_vm2 }
 0x5db   :  { %1213 = vrot.lane.b32.xlu0 %v1208_v5, %s1425_s21  ;;  %1215 = vrot.lane.b32.xlu1 %v2409_v2, %s1425_s21  ;;  %v589_v60 = vpop.permute.xlu1 %588  ;;  %v1252_v50 = vmul.f32 0.75, %v1208_v5  ;;  %v1253_v44 = vmul.f32 0.75, %v2409_v2 }
 0x5dc   :  { %v591_v61 = vadd.f32 %v589_v60, %v582_v23  ;;  %v592_v41 = vadd.f32 %v589_v60, %v583_v52  ;;  %v594_v36 = vadd.f32 %v589_v60, %v585_v1 }
 0x5df   :  { %1217 = vrot.lane.b32.xlu0 %v2415_v42, %s1425_s21  ;;  %1223 = vrot.lane.b32.xlu1 %v2373_v29, %s1420_s15  ;;  %v1212_v58 = vpop.permute.xlu1 %1211 }
 0x5e1   :  { %v1396_v19 = vpop.eup %1395 }
 0x5e2   :  { %v899_v48 = vmul.f32 %v1396_v19, %v875_v25 }
 0x5e3   :  { %1225 = vrot.lane.b32.xlu0 %v1208_v5, %s1420_s15  ;;  %1227 = vrot.lane.b32.xlu1 %v2409_v2, %s1420_s15 }
 0x5e7   :  { %902 = vperm.xlu0 %1373, %v899_v48  }
 0x5eb   :  { %1229 = vrot.lane.b32.xlu0 %v2415_v42, %s1420_s15  ;;  %s1277_s15 = sshll.u32 %s1430_s7, 4  ;;  %s1278_s15 = int_to_ptr.vmem [resolvable:$true] %s1277_s15 }
 0x5ec   :  { %s1397_s19 = scalar_lea.vmem %s1278_s15, 512  ;;  %p1402_p1 = scmp.lt.s32.totalorder %s1278_s15, %s1278_s15 }
 0x5ed   :  { %p1398_p0 = scmp.ne.s32.totalorder %s1278_s15, %s1397_s19  ;;  %p1403_p2 = scmp.lt.s32.totalorder %s1397_s19, %s1397_s19 }
 0x5ef   :  { %p1404_p3 = por %p1403_p2, %p1402_p1 }
 0x5f1   :  { %p1405_p4 = pnand %p1404_p3, %p1398_p0 }
 0x64d   :  { %v1214_v18 = vpop.permute.xlu0 %1213  ;;  %v1216_v55 = vpop.permute.xlu1 %1215 }
 0x64e   :  { %v1221_v27 = vsel %vm2727_vm2, %v1212_v58, %v1214_v18  ;;  %v1220_v59 = vsel %vm2736_vm3, %v1214_v18, %v1216_v55  ;;  %vm2738_vm2 = vcmp.lt.s32.totalorder %v1590_v8, 112  ;;  %v1254_v8 = vmul.f32 0.75, %v2415_v42 }
 0x651   :  { %v1218_v38 = vpop.permute.xlu0 %1217  ;;  %v1224_v24 = vpop.permute.xlu1 %1223 }
 0x652   :  { %v1222_v20 = vsel %vm2728_vm8, %v1218_v38, %v1212_v58  ;;  %v1219_v31 = vsel %vm2737_vm7, %v1216_v55, %v1218_v38  ;;  %vm2739_vm8 = vmmov %vm2738_vm2 }
 0x655   :  { %v1226_v62 = vpop.permute.xlu0 %1225  ;;  %v1228_v4 = vpop.permute.xlu1 %1227 }
 0x656   :  { %v1233_v22 = vsel %vm2723_vm0, %v1224_v24, %v1226_v62  ;;  %v1232_v51 = vsel %vm2726_vm12, %v1226_v62, %v1228_v4  ;;  %vm105_vm0 = vmand %vm2735_vm9, %vm2734_vm14 }
 0x657   :  { %v1235_v15 = vsel %vm2261_vm10, %v1222_v20, %v1233_v22  ;;  %v1236_v13 = vsel %vm2729_vm13, %v1221_v27, %v1232_v51  ;;  %vm2730_vm10 = vcmp.ne.s32.totalorder %v1645_v35, 15  ;;  %v593_v35 = vadd.f32 %v589_v60, %v584_v17  ;;  %vm109_vm12 = vmxor %vm105_vm0, %vm2718_vm11 }
 0x658   :  { %v1247_v14 = vsel %vm106_vm4, %v2373_v29, %v1235_v15  ;;  %v1248_v57 = vsel %vm107_vm6, %v1208_v5, %v1236_v13  ;;  %vm2464_vm15 = vmand %vm2731_vm5, %vm2730_vm10  ;;  %vm2740_vm4 = vnez %v2693_v56  ;;  %vm2741_vm6 = vnez %v2698_v49 }
 0x659   :  { %vm108_vm1 = vmxor %vm2464_vm15, %vm2718_vm11 }
 0x662   :  { %v903_v28 = vpop.permute.xlu0 %902 }
 0x663   :  { %v905_v39 = vmul.f32 %v903_v28, %v2332_v26  ;;  %v906_v32 = vmul.f32 %v903_v28, %v2334_v33  ;;  %v907_v9 = vmul.f32 %v903_v28, %v2336_v37  ;;  %v908_v10 = vmul.f32 %v903_v28, %v2338_v3 }
 0x664   :  { %v1255_v26 = vmul.f32 0.25, %v1247_v14  ;;  %v1256_v33 = vmul.f32 0.25, %v1248_v57 }
 0x665   :  { %v914_v6 = vadd.f32 %v912_v54, %v905_v39  ;;  %v915_v37 = vadd.f32 %v912_v54, %v906_v32  ;;  %v916_v3 = vadd.f32 %v912_v54, %v907_v9  ;;  %v917_v30 = vadd.f32 %v912_v54, %v908_v10 }
 0x666   :  { %v1230_v12 = vpop.permute.xlu0 %1229  ;;  %v1259_v43 = vadd.f32 %v1255_v26, %v1251_v40  ;;  %v1260_v16 = vadd.f32 %v1256_v33, %v1252_v50 }
 0x667   :  { %v918_v46 = vadd.f32 %v914_v6, %v591_v61  ;;  %v919_v34 = vadd.f32 %v915_v37, %v592_v41  ;;  %v1231_v29 = vsel %vm2738_vm2, %v1228_v4, %v1230_v12  ;;  %v1234_v0 = vsel %vm2739_vm8, %v1230_v12, %v1224_v24 }
 0x668   :  { %v920_v21 = vadd.f32 %v916_v3, %v593_v35  ;;  %v921_v47 = vadd.f32 %v917_v30, %v594_v36  ;;  %v1237_v7 = vsel %vm2740_vm4, %v1220_v59, %v1231_v29  ;;  %v1238_v5 = vsel %vm2741_vm6, %v1219_v31, %v1234_v0 }
 0x669   :  { %v922_v45 = vmax.f32 %v918_v46, 0.0  ;;  %v923_v11 = vmax.f32 %v919_v34, 0.0  ;;  %v1249_v63 = vsel %vm108_vm1, %v2409_v2, %v1237_v7  ;;  %v1250_v19 = vsel %vm109_vm12, %v2415_v42, %v1238_v5 }
 0x66a   :  { %v1257_v60 = vmul.f32 0.25, %v1249_v63  ;;  %v1258_v54 = vmul.f32 0.25, %v1250_v19  ;;  %v924_v56 = vmax.f32 %v920_v21, 0.0  ;;  %v925_v58 = vmax.f32 %v921_v47, 0.0 }
 0x66b   :  { %v1263_v25 = vmul.f32 %v1259_v43, %v922_v45  ;;  %v1264_v48 = vmul.f32 %v1260_v16, %v923_v11 }
 0x66c   :  { %v1261_v49 = vadd.f32 %v1257_v60, %v1253_v44  ;;  %v1262_v18 = vadd.f32 %v1258_v54, %v1254_v8 }
 0x66d   :  { %1267 = vst [vmem:[#allocation2] sm:$0xff] %v1263_v25  ;;  %1268 = vst [vmem:[#allocation2 + $0x8] sm:$0xff] %v1264_v48 }
 0x66e   :  { %v1265_v55 = vmul.f32 %v1261_v49, %v924_v56  ;;  %v1266_v38 = vmul.f32 %v1262_v18, %v925_v58 }
 0x670   :  { %1269 = vst [vmem:[#allocation2 + $0x10] sm:$0xff] %v1265_v55  ;;  %1270 = vst [vmem:[#allocation2 + $0x18] sm:$0xff] %v1266_v38 }
 0x671   :  { %1408 = shalt.err (!%p1405_p4)
}
 0x672   :  { %1280 = dma.vmem_to_hbm [thread:$0]  %s1278_s15, 512, %s2509_s13, [#allocation3]  }
 0x673   :  { %1417 = dma.done.wait [#allocation3], 512  }
 0x674   :  { %1418 = vsyncadd [#allocation3], 4294966784 }
 0x675   :  { %1284 = vsyncpa [#allocation3], 1 }

</bundles_post_ra>
